<compile_context>
chip_gen: v7x
topology: tpu7x:2x2x1
jax: 0.10.0
libtpu: 0.0.40
codegen_flags: <defaults>
</compile_context>

<pallas_src>
import jax
import jax.numpy as jnp
from jax import lax
from jax.experimental import pallas as pl
from jax.experimental.pallas import tpu as pltpu


def _param_refresh_kernel(w32_ref, b32_ref, w16_ref, b16_ref):
    # Step 2: fp32 master -> half param ("copy_tensor_to_chunk_slice").
    # The (r, c) grid visits each weight tile exactly once, so each half tile
    # is cast and stored to HBM exactly once (no redundant writes).
    w16_ref[...] = w32_ref[...].astype(w16_ref.dtype)

    # Bias output block index is (0, r): constant across the inner c axis, so
    # the block stays resident in VMEM and is written back once per r tile.
    # Cast it only on the first c step.
    @pl.when(pl.program_id(1) == 0)
    def _():
        b16_ref[...] = b32_ref[...].astype(b16_ref.dtype)


def _linear_fwd_kernel(x_ref, w_ref, b_ref, y_ref, acc_ref):
    # Step 3: wrapped module forward y = x @ W.T + b (AMP mixed precision).
    k = pl.program_id(2)

    @pl.when(k == 0)
    def _():
        acc_ref[...] = jnp.zeros_like(acc_ref)

    # bf16 tiles go straight to the MXU with fp32 accumulation. The weight
    # keeps its native PyTorch [H_out, H_in] layout: contract the last (lane)
    # dim of both operands (same pattern as flash-attn's q @ k.T), which Mosaic
    # lowers to the MXU without a per-k-step VMEM transpose.
    # TODO(synk): if a vxpose shows up in the inner-loop bundle on some chip,
    # emit a K-major ([H_in, H_out]) W16 from kernel 1 (XLU slack there is free)
    # and switch this to a plain [M,K]x[K,N] dot.
    acc_ref[...] += lax.dot_general(
        x_ref[...], w_ref[...],
        dimension_numbers=(((1,), (1,)), ((), ())),
        preferred_element_type=jnp.float32)

    @pl.when(k == pl.num_programs(2) - 1)
    def _():
        y_ref[...] = (acc_ref[...]
                      + b_ref[...].astype(jnp.float32)).astype(y_ref.dtype)


def _pick_tile(dim, want, align):
    """Largest tile <= `want` that divides `dim`.

    Full extent if dim <= want (always legal). Otherwise prefer divisors that
    are multiples of `align` (the (8,128) layout rule), falling back to the
    largest plain divisor.
    """
    if dim <= want:
        return dim
    best_unaligned = None
    for t in range(want, 0, -1):
        if dim % t == 0:
            if t % align == 0:
                return t
            if best_unaligned is None:
                best_unaligned = t
    return best_unaligned if best_unaligned is not None else dim


def colo_ddp_v2_forward(x_half, w_master_fp32, b_master_fp32, *,
                        param_dtype=jnp.bfloat16,   # TPU-native "half"
                        tm=256, tn=512, tk=1024,    # matmul tiles (256-aligned
                                                    # for v6e/v7x 256x256 MXU)
                        tr=512, tc=1024,            # refresh-cast tiles
                        vmem_limit_bytes=None):
    """Functional equivalent of ColoDDPV2.forward for a Linear submodule.

    Returns (y [B, H_out], w16 [H_out, H_in], b16 [1, H_out]) in `param_dtype`.
    """
    B, H_in = x_half.shape
    H_out, H_in_w = w_master_fp32.shape
    assert H_in == H_in_w
    assert b_master_fp32.shape == (H_out,)

    half_bytes = jnp.dtype(param_dtype).itemsize

    # Tile selection: full extent or an (8,128)-friendly divisor <= default.
    tm = _pick_tile(B, tm, 8)        # sublane axis of x / y tiles
    tn = _pick_tile(H_out, tn, 128)  # lane axis of y / bias tiles
    tk = _pick_tile(H_in, tk, 128)   # lane axis of x / W tiles (contraction)
    tr = _pick_tile(H_out, tr, 128)  # sublane axis of W tile, lane axis of bias
    tc = _pick_tile(H_in, tc, 128)   # lane axis of W tile
    assert B % tm == 0 and H_out % tn == 0 and H_in % tk == 0
    assert H_out % tr == 0 and H_in % tc == 0

    b32_2d = b_master_fp32.reshape(1, H_out)

    # zero_grad(set_to_none=True): no gradient state in this functional port.
    # TODO(synk): chunk_manager state transitions / exec_lazy_release / ZeRO
    # param-op hooks / backward all_reduce are host-side memory & comm
    # management with no forward-pass Pallas equivalent.

    # ---- Kernel 1: refresh half params from fp32 masters (mem-bound cast) ----
    w16, b16 = pl.pallas_call(
        _param_refresh_kernel,
        out_shape=(jax.ShapeDtypeStruct((H_out, H_in), param_dtype),
                   jax.ShapeDtypeStruct((1, H_out), param_dtype)),
        grid_spec=pltpu.PrefetchScalarGridSpec(
            num_scalar_prefetch=0,
            grid=(H_out // tr, H_in // tc),
            in_specs=[
                pl.BlockSpec((tr, tc), lambda r, c: (r, c)),
                pl.BlockSpec((1, tr), lambda r, c: (0, r)),
            ],
            out_specs=[
                pl.BlockSpec((tr, tc), lambda r, c: (r, c)),
                pl.BlockSpec((1, tr), lambda r, c: (0, r)),
            ],
        ),
        compiler_params=pltpu.CompilerParams(
            dimension_semantics=("parallel", "arbitrary"),
            vmem_limit_bytes=vmem_limit_bytes),
        cost_estimate=pl.CostEstimate(
            flops=0,
            transcendentals=0,
            bytes_accessed=(4 + half_bytes) * H_out * H_in
                           + (4 + half_bytes) * H_out),
    )(w_master_fp32, b32_2d)

    # ---- Kernel 2: module forward (tiled bf16 matmul, fp32 accumulation) ----
    # TODO(synk): for tiny batches (B <= ~2*tm) fusing the W cast into this
    # kernel would save the W16 HBM round-trip; kept split for the general case
    # where fp16/bf16 W16 re-reads are cheaper than fp32 master re-reads.
    matmul_flops = 2 * B * H_out * H_in
    matmul_bytes = (half_bytes * B * H_in          # x
                    + half_bytes * H_out * H_in    # W16
                    + half_bytes * H_out           # b16
                    + half_bytes * B * H_out)      # y

    y = pl.pallas_call(
        _linear_fwd_kernel,
        out_shape=jax.ShapeDtypeStruct((B, H_out), param_dtype),
        grid_spec=pltpu.PrefetchScalarGridSpec(
            num_scalar_prefetch=0,
            grid=(B // tm, H_out // tn, H_in // tk),
            in_specs=[
                pl.BlockSpec((tm, tk), lambda i, j, k: (i, k)),   # x tile
                pl.BlockSpec((tn, tk), lambda i, j, k: (j, k)),   # W16 tile ([N, K])
                pl.BlockSpec((1, tn), lambda i, j, k: (0, j)),    # bias tile
            ],
            out_specs=pl.BlockSpec((tm, tn), lambda i, j, k: (i, j)),
            scratch_shapes=[pltpu.VMEM((tm, tn), jnp.float32)],   # fp32 accumulator
        ),
        compiler_params=pltpu.CompilerParams(
            dimension_semantics=("parallel", "parallel", "arbitrary"),
            vmem_limit_bytes=vmem_limit_bytes),
        cost_estimate=pl.CostEstimate(
            flops=matmul_flops, transcendentals=0, bytes_accessed=matmul_bytes),
    )(x_half, w16, b16)

    return y, w16, b16


if __name__ == "__main__":
    key = jax.random.PRNGKey(0)
    k_x, k_w, k_b = jax.random.split(key, 3)

    # Small tile-aligned demo shapes for a Linear(H_in -> H_out) submodule.
    B, H_in, H_out = 512, 1024, 512

    x = jax.random.normal(k_x, (B, H_in), dtype=jnp.float32).astype(jnp.bfloat16)
    w_master = jax.random.normal(k_w, (H_out, H_in), dtype=jnp.float32) * 0.1
    b_master = jax.random.normal(k_b, (H_out,), dtype=jnp.float32) * 0.01

    # Reference (pure JAX), same mixed-precision semantics.
    w16_ref = w_master.astype(jnp.bfloat16)                  # [H_out, H_in]
    b16_ref = b_master.reshape(1, -1).astype(jnp.bfloat16)   # [1, H_out]
    y_ref = (x.astype(jnp.float32) @ w16_ref.astype(jnp.float32).T
             + b16_ref.astype(jnp.float32)).astype(jnp.bfloat16)

    # 1) Default (large-tile) configuration.
    y, w16, b16 = colo_ddp_v2_forward(x, w_master, b_master)
    jax.block_until_ready((y, w16, b16))

    assert y.shape == (B, H_out) and y.dtype == jnp.bfloat16
    assert w16.dtype == jnp.bfloat16 and b16.dtype == jnp.bfloat16
    assert jnp.array_equal(w16, w16_ref)
    assert jnp.array_equal(b16, b16_ref)
    assert jnp.allclose(y.astype(jnp.float32), y_ref.astype(jnp.float32),
                        atol=1e-1, rtol=2e-2)

    # 2) Smaller tiles to exercise multi-step K accumulation and M/N tiling.
    y2, w16_2, b16_2 = colo_ddp_v2_forward(
        x, w_master, b_master, tm=128, tn=256, tk=256, tr=256, tc=512)
    jax.block_until_ready((y2, w16_2, b16_2))

    assert jnp.array_equal(w16_2, w16_ref)
    assert jnp.array_equal(b16_2, b16_ref)
    assert jnp.allclose(y2.astype(jnp.float32), y_ref.astype(jnp.float32),
                        atol=1e-1, rtol=2e-2)

    print("KERNEL_OK")
</pallas_src>

<mosaic_0001>
module attributes {stable_mosaic.version = 11 : i64} {
  func.func @_param_refresh_kernel(%arg0: i32, %arg1: i32, %arg2: memref<512x1024xf32, #tpu.memory_space<vmem>>, %arg3: memref<1x512xf32, #tpu.memory_space<vmem>>, %arg4: memref<512x1024xbf16, #tpu.memory_space<vmem>>, %arg5: memref<1x512xbf16, #tpu.memory_space<vmem>>) attributes {dimension_semantics = [#tpu.dimension_semantics<parallel>, #tpu.dimension_semantics<arbitrary>], iteration_bounds = array<i64: 1, 1>, scalar_prefetch = 0 : i64, scratch_operands = 0 : i64, tpu.core_type = #tpu.core_type<tc>, window_params = [{transform_indices = @transform_0, window_bounds = array<i64: 512, 1024>}, {transform_indices = @transform_1, window_bounds = array<i64: 1, 512>}, {transform_indices = @transform_2, window_bounds = array<i64: 512, 1024>}, {transform_indices = @transform_3, window_bounds = array<i64: 1, 512>}]} {
    %c0 = arith.constant 0 : index
    %c0_0 = arith.constant 0 : index
    %0 = vector.load %arg2[%c0, %c0_0] : memref<512x1024xf32, #tpu.memory_space<vmem>>, vector<512x1024xf32>
    %1 = arith.truncf %0 : vector<512x1024xf32> to vector<512x1024xbf16>
    %c0_1 = arith.constant 0 : index
    %c0_2 = arith.constant 0 : index
    %2 = vector.load %arg4[%c0_1, %c0_2] : memref<512x1024xbf16, #tpu.memory_space<vmem>>, vector<512x1024xbf16>
    tpu.vector_store %arg4[%c0_1, %c0_2], %1 {strides = array<i32>} : memref<512x1024xbf16, #tpu.memory_space<vmem>>, vector<512x1024xbf16>,
    %c0_i32 = arith.constant 0 : i32
    %3 = arith.cmpi eq, %arg1, %c0_i32 : i32
    %4 = arith.extui %3 : i1 to i32
    %c0_i32_3 = arith.constant 0 : i32
    %5 = arith.cmpi ne, %4, %c0_i32_3 : i32
    scf.if %5 {
      %c0_4 = arith.constant 0 : index
      %c0_5 = arith.constant 0 : index
      %6 = vector.load %arg3[%c0_4, %c0_5] : memref<1x512xf32, #tpu.memory_space<vmem>>, vector<1x512xf32>
      %7 = arith.truncf %6 : vector<1x512xf32> to vector<1x512xbf16>
      %c0_6 = arith.constant 0 : index
      %c0_7 = arith.constant 0 : index
      %8 = vector.load %arg5[%c0_6, %c0_7] : memref<1x512xbf16, #tpu.memory_space<vmem>>, vector<1x512xbf16>
      tpu.vector_store %arg5[%c0_6, %c0_7], %7 {strides = array<i32>} : memref<1x512xbf16, #tpu.memory_space<vmem>>, vector<1x512xbf16>,
    } else {
    }
    return
  }
  func.func @transform_0(%arg0: i32, %arg1: i32) -> (i32, i32) {
    %c0_i32 = arith.constant 0 : i32
    return %arg0, %arg1 : i32, i32
  }
  func.func @transform_1(%arg0: i32, %arg1: i32) -> (i32, i32) {
    %c0_i32 = arith.constant 0 : i32
    %c0_i32_0 = arith.constant 0 : i32
    return %c0_i32, %arg0 : i32, i32
  }
  func.func @transform_2(%arg0: i32, %arg1: i32) -> (i32, i32) {
    %c0_i32 = arith.constant 0 : i32
    return %arg0, %arg1 : i32, i32
  }
  func.func @transform_3(%arg0: i32, %arg1: i32) -> (i32, i32) {
    %c0_i32 = arith.constant 0 : i32
    %c0_i32_0 = arith.constant 0 : i32
    return %c0_i32, %arg0 : i32, i32
  }
}

</mosaic_0001>

<bundles_post_ra>
// kernel: tpu_custom_call.1
= control target key start
LH: loop header
LB: loop body
LE: loop exit
PB: predicated region body
PF: predicated region fallthrough
CT: control target
= control target key end

     0   :  { %9 = vsyncpa [#allocation3], 0  ;;  %s3195_s0 = inlined_call_operand.hbm [shape: f32[512,1024], index: 0, kind: input, shape index: {}]   ;;  %s3196_s1 = inlined_call_operand.hbm [shape: f32[1,512], index: 1, kind: input, shape index: {}]   ;;  %s3197_s2 = inlined_call_operand.hbm [shape: bf16[512,1024], index: 2, kind: output, shape index: {0}]   ;;  %s3198_s3 = inlined_call_operand.hbm [shape: bf16[1,512], index: 3, kind: output, shape index: {1}]  }
   0x1   :  { %10 = vsyncpa [#allocation6], 0 }
   0x2   :  { %11 = vsyncpa [#allocation4], 0 }
   0x3   :  { %12 = vsyncpa [#allocation9], 0  ;;  %s3073_s12 = smov [#allocation2]   ;;  %s2977_s16 = scalar_lea.hbm %s3195_s0, 65536 }
   0x4   :  { %s18_s13 = sshll.u32 %s3073_s12, 4  ;;  %p2978_p0 = scmp.ne.s32.totalorder %s3195_s0, %s2977_s16  ;;  %s19_s13 = int_to_ptr.vmem [resolvable:$true] %s18_s13 }
   0x5   :  { %p2981_p1 = scmp.lt.u32.totalorder %s2977_s16, %s3195_s0 }
   0x7   :  { %p2983_p2 = pnand %p2981_p1, %p2978_p0 }
   0x9   :  { %2986 = shalt.err (!%p2983_p2)
}
   0xa   :  { %s2987_s21 = scalar_lea.vmem %s19_s13, 65536  ;;  %p2992_p4 = scmp.lt.s32.totalorder %s19_s13, %s19_s13 }
   0xb   :  { %p2988_p3 = scmp.ne.s32.totalorder %s19_s13, %s2987_s21  ;;  %p2993_p5 = scmp.lt.s32.totalorder %s2987_s21, %s2987_s21 }
   0xd   :  { %p2994_p6 = por %p2993_p5, %p2992_p4 }
   0xf   :  { %p2995_p7 = pnand %p2994_p6, %p2988_p3 }
  0x11   :  { %2998 = shalt.err (!%p2995_p7)
}
  0x12   :  { %s3074_s22 = smov 1024   ;;  %s3075_s23 = smov 64  }
  0x13   :  { %24 = dma.hbm_to_vmem [thread:$0]  %s3195_s0, 65536, %s19_s13, [#allocation3], %s3074_s22, %s3074_s22, %s3075_s23  }
  0x14   :  { %s3076_s26 = smov [#allocation5]   ;;  %s2999_s30 = scalar_lea.hbm %s3196_s1, 64 }
  0x15   :  { %s31_s27 = sshll.u32 %s3076_s26, 4  ;;  %p3000_p8 = scmp.ne.s32.totalorder %s3196_s1, %s2999_s30  ;;  %s32_s27 = int_to_ptr.vmem [resolvable:$true] %s31_s27 }
  0x16   :  { %p3003_p9 = scmp.lt.u32.totalorder %s2999_s30, %s3196_s1 }
  0x18   :  { %p3005_p10 = pnand %p3003_p9, %p3000_p8 }
  0x1a   :  { %3008 = shalt.err (!%p3005_p10)
}
  0x1b   :  { %s3009_s8 = scalar_lea.vmem %s32_s27, 64  ;;  %p3014_p12 = scmp.lt.s32.totalorder %s32_s27, %s32_s27 }
  0x1c   :  { %p3010_p11 = scmp.ne.s32.totalorder %s32_s27, %s3009_s8  ;;  %p3015_p13 = scmp.lt.s32.totalorder %s3009_s8, %s3009_s8 }
  0x1e   :  { %p3016_p0 = por %p3015_p13, %p3014_p12 }
  0x20   :  { %p3017_p1 = pnand %p3016_p0, %p3010_p11 }
  0x22   :  { %3020 = shalt.err (!%p3017_p1)
}
  0x23   :  { %34 = dma.hbm_to_vmem [thread:$0]  %s3196_s1, 64, %s32_s27, [#allocation6]  }
  0x24   :  { %3065 = dma.done.wait [#allocation3], 65536  }
  0x25   :  { %3066 = vsyncadd [#allocation3], 4294901760 }
  0x26   :  { %3067 = dma.done.wait [#allocation6], 64  }
  0x27   :  { %3068 = vsyncadd [#allocation6], 4294967232  ;;  %v41_v0 = vld [vmem:[#allocation2] sm:$0xff]  ;;  %v42_v1 = vld [vmem:[#allocation2 + $0x8] sm:$0xff]  ;;  %vm2404_vm0 = vcmask 1040384   ;;  %s3078_s1 = smov [#allocation7]  }
  0x28   :  { %v43_v2 = vld [vmem:[#allocation2 + $0x10] sm:$0xff]  ;;  %v2712_v3 = vpack.c.bf16 %v42_v1, %v41_v0  ;;  %v44_v4 = vld [vmem:[#allocation2 + $0x18] sm:$0xff]  ;;  %v45_v5 = vld [vmem:[#allocation2 + $0x20] sm:$0xff]  ;;  %s2427_s10 = sshll.u32 %s3078_s1, 4  ;;  %vm2405_vm1 = vsmask.f32 256  ;;  %s3133_s10 = int_to_ptr.vmem [resolvable:$true] %s2427_s10 }
  0x29   :  { %v46_v6 = vld [vmem:[#allocation2 + $0x28] sm:$0xff]  ;;  %v2713_v7 = vpack.c.bf16 %v44_v4, %v43_v2  ;;  %v47_v9 = vld [vmem:[#allocation2 + $0x30] sm:$0xff]  ;;  %v48_v10 = vld [vmem:[#allocation2 + $0x38] sm:$0xff]  ;;  %vm2407_vm2 = vcmask 1041409   ;;  %vm2408_vm3 = vsmask.f32 1280  ;;  %p3026_p3 = scmp.lt.s32.totalorder %s3133_s10, %s3133_s10 }
  0x2a   :  { %v2714_v8 = vpack.c.bf16 %v46_v6, %v45_v5  ;;  %v49_v11 = vld [vmem:[#allocation2 + $0x40] sm:$0xff]  ;;  %2089 = vst [vmem:[#allocation7] sm:$0xff] %v2712_v3  ;;  %v2715_v12 = vpack.c.bf16 %v48_v10, %v47_v9  ;;  %v50_v13 = vld [vmem:[#allocation2 + $0x48] sm:$0xff]  ;;  %v51_v14 = vld [vmem:[#allocation2 + $0x50] sm:$0xff]  ;;  %vm2411_vm4 = vcmask 1042434   ;;  %vm2415_vm9 = vcmask 1043459  }
  0x2b   :  { %v52_v15 = vld [vmem:[#allocation2 + $0x58] sm:$0xff]  ;;  %2090 = vst [vmem:[#allocation7 + $0x8] sm:$0xff] %v2713_v7  ;;  %v2716_v16 = vpack.c.bf16 %v50_v13, %v49_v11  ;;  %v53_v18 = vld [vmem:[#allocation2 + $0x60] sm:$0xff]  ;;  %v54_v19 = vld [vmem:[#allocation2 + $0x68] sm:$0xff]  ;;  %vm2412_vm5 = vsmask.f32 2304 }
  0x2c   :  { %2091 = vst [vmem:[#allocation7 + $0x10] sm:$0xff] %v2714_v8  ;;  %v2717_v17 = vpack.c.bf16 %v52_v15, %v51_v14  ;;  %v55_v20 = vld [vmem:[#allocation2 + $0x70] sm:$0xff]  ;;  %2092 = vst [vmem:[#allocation7 + $0x18] sm:$0xff] %v2715_v12  ;;  %v2718_v21 = vpack.c.bf16 %v54_v19, %v53_v18  ;;  %v56_v22 = vld [vmem:[#allocation2 + $0x78] sm:$0xff]  ;;  %vm2416_vm10 = vsmask.f32 3328 }
  0x2d   :  { %v57_v23 = vld [vmem:[#allocation2 + $0x80] sm:$0xff]  ;;  %v58_v24 = vld [vmem:[#allocation2 + $0x88] sm:$0xff]  ;;  %2093 = vst [vmem:[#allocation7 + $0x20] sm:$0xff] %v2716_v16  ;;  %v2719_v25 = vpack.c.bf16 %v56_v22, %v55_v20  ;;  %v59_v27 = vld [vmem:[#allocation2 + $0x90] sm:$0xff]  ;;  %s3021_s11 = scalar_lea.vmem %s3133_s10, 32768 }
  0x2e   :  { %2094 = vst [vmem:[#allocation7 + $0x28] sm:$0xff] %v2717_v17  ;;  %v2720_v26 = vpack.c.bf16 %v58_v24, %v57_v23  ;;  %v60_v28 = vld [vmem:[#allocation2 + $0x98] sm:$0xff]  ;;  %v61_v29 = vld [vmem:[#allocation2 + $0xa0] sm:$0xff]  ;;  %2095 = vst [vmem:[#allocation7 + $0x30] sm:$0xff] %v2718_v21  ;;  %p3022_p2 = scmp.ne.s32.totalorder %s3133_s10, %s3021_s11  ;;  %p3027_p4 = scmp.lt.s32.totalorder %s3021_s11, %s3021_s11 }
  0x2f   :  { %v2721_v30 = vpack.c.bf16 %v60_v28, %v59_v27  ;;  %v62_v31 = vld [vmem:[#allocation2 + $0xa8] sm:$0xff]  ;;  %v63_v32 = vld [vmem:[#allocation2 + $0xb0] sm:$0xff]  ;;  %v64_v33 = vld [vmem:[#allocation2 + $0xb8] sm:$0xff]  ;;  %2096 = vst [vmem:[#allocation7 + $0x38] sm:$0xff] %v2719_v25 }
  0x30   :  { %2097 = vst [vmem:[#allocation7 + $0x40] sm:$0xff] %v2720_v26  ;;  %v2722_v34 = vpack.c.bf16 %v62_v31, %v61_v29  ;;  %v2723_v35 = vpack.c.bf16 %v64_v33, %v63_v32  ;;  %v65_v36 = vld [vmem:[#allocation2 + $0xc0] sm:$0xff]  ;;  %v66_v37 = vld [vmem:[#allocation2 + $0xc8] sm:$0xff]  ;;  %v67_v38 = vld [vmem:[#allocation2 + $0xd0] sm:$0xff]  ;;  %p3028_p5 = por %p3027_p4, %p3026_p3 }
  0x31   :  { %2098 = vst [vmem:[#allocation7 + $0x48] sm:$0xff] %v2721_v30  ;;  %v2724_v39 = vpack.c.bf16 %v66_v37, %v65_v36  ;;  %v68_v40 = vld [vmem:[#allocation2 + $0xd8] sm:$0xff]  ;;  %v69_v41 = vld [vmem:[#allocation2 + $0xe0] sm:$0xff]  ;;  %v70_v42 = vld [vmem:[#allocation2 + $0xe8] sm:$0xff] }
  0x32   :  { %2099 = vst [vmem:[#allocation7 + $0x50] sm:$0xff] %v2722_v34  ;;  %2100 = vst [vmem:[#allocation7 + $0x58] sm:$0xff] %v2723_v35  ;;  %v2725_v43 = vpack.c.bf16 %v68_v40, %v67_v38  ;;  %v2726_v44 = vpack.c.bf16 %v70_v42, %v69_v41  ;;  %v71_v45 = vld [vmem:[#allocation2 + $0xf0] sm:$0xff]  ;;  %v72_v46 = vld [vmem:[#allocation2 + $0xf8] sm:$0xff]  ;;  %p3029_p6 = pnand %p3028_p5, %p3022_p2 }
  0x33   :  { %v73_v47 = vld [vmem:[#allocation2 + $0x100] sm:$0xff]  ;;  %2101 = vst [vmem:[#allocation7 + $0x60] sm:$0xff] %v2724_v39  ;;  %v2727_v48 = vpack.c.bf16 %v72_v46, %v71_v45  ;;  %v74_v49 = vld [vmem:[#allocation2 + $0x108] sm:$0xff]  ;;  %v75_v50 = vld [vmem:[#allocation2 + $0x110] sm:$0xff] }
  0x34   :  { %v76_v51 = vld [vmem:[#allocation2 + $0x118] sm:$0xff]  ;;  %2102 = vst [vmem:[#allocation7 + $0x68] sm:$0xff] %v2725_v43  ;;  %2103 = vst [vmem:[#allocation7 + $0x70] sm:$0xff] %v2726_v44  ;;  %v2728_v52 = vpack.c.bf16 %v74_v49, %v73_v47  ;;  %v77_v54 = vld [vmem:[#allocation2 + $0x120] sm:$0xff] }
  0x35   :  { %v2729_v53 = vpack.c.bf16 %v76_v51, %v75_v50  ;;  %v78_v55 = vld [vmem:[#allocation2 + $0x128] sm:$0xff]  ;;  %v79_v56 = vld [vmem:[#allocation2 + $0x130] sm:$0xff]  ;;  %2104 = vst [vmem:[#allocation7 + $0x78] sm:$0xff] %v2727_v48  ;;  %v80_v58 = vld [vmem:[#allocation2 + $0x138] sm:$0xff] }
  0x36   :  { %v2730_v57 = vpack.c.bf16 %v78_v55, %v77_v54  ;;  %v81_v59 = vld [vmem:[#allocation2 + $0x140] sm:$0xff]  ;;  %v82_v60 = vld [vmem:[#allocation2 + $0x148] sm:$0xff]  ;;  %2105 = vst [vmem:[#allocation7 + $0x80] sm:$0xff] %v2728_v52  ;;  %v2731_v61 = vpack.c.bf16 %v80_v58, %v79_v56  ;;  %v83_v63 = vld [vmem:[#allocation2 + $0x150] sm:$0xff] }
  0x37   :  { %2106 = vst [vmem:[#allocation7 + $0x88] sm:$0xff] %v2729_v53  ;;  %v2732_v62 = vpack.c.bf16 %v82_v60, %v81_v59  ;;  %v84_v0 = vld [vmem:[#allocation2 + $0x158] sm:$0xff]  ;;  %v85_v1 = vld [vmem:[#allocation2 + $0x160] sm:$0xff]  ;;  %v86_v3 = vld [vmem:[#allocation2 + $0x168] sm:$0xff] }
  0x38   :  { %2107 = vst [vmem:[#allocation7 + $0x90] sm:$0xff] %v2730_v57  ;;  %v2733_v2 = vpack.c.bf16 %v84_v0, %v83_v63  ;;  %v87_v4 = vld [vmem:[#allocation2 + $0x170] sm:$0xff]  ;;  %v88_v5 = vld [vmem:[#allocation2 + $0x178] sm:$0xff]  ;;  %2108 = vst [vmem:[#allocation7 + $0x98] sm:$0xff] %v2731_v61  ;;  %v2734_v6 = vpack.c.bf16 %v86_v3, %v85_v1 }
  0x39   :  { %2109 = vst [vmem:[#allocation7 + $0xa0] sm:$0xff] %v2732_v62  ;;  %v2735_v7 = vpack.c.bf16 %v88_v5, %v87_v4  ;;  %v89_v8 = vld [vmem:[#allocation2 + $0x180] sm:$0xff]  ;;  %v90_v9 = vld [vmem:[#allocation2 + $0x188] sm:$0xff]  ;;  %v91_v10 = vld [vmem:[#allocation2 + $0x190] sm:$0xff] }
  0x3a   :  { %2110 = vst [vmem:[#allocation7 + $0xa8] sm:$0xff] %v2733_v2  ;;  %v2736_v11 = vpack.c.bf16 %v90_v9, %v89_v8  ;;  %v92_v12 = vld [vmem:[#allocation2 + $0x198] sm:$0xff]  ;;  %v93_v13 = vld [vmem:[#allocation2 + $0x1a0] sm:$0xff]  ;;  %v94_v14 = vld [vmem:[#allocation2 + $0x1a8] sm:$0xff] }
  0x3b   :  { %2111 = vst [vmem:[#allocation7 + $0xb0] sm:$0xff] %v2734_v6  ;;  %2112 = vst [vmem:[#allocation7 + $0xb8] sm:$0xff] %v2735_v7  ;;  %v2737_v15 = vpack.c.bf16 %v92_v12, %v91_v10  ;;  %v2738_v16 = vpack.c.bf16 %v94_v14, %v93_v13  ;;  %v95_v17 = vld [vmem:[#allocation2 + $0x1b0] sm:$0xff]  ;;  %v96_v18 = vld [vmem:[#allocation2 + $0x1b8] sm:$0xff] }
  0x3c   :  { %v97_v19 = vld [vmem:[#allocation2 + $0x1c0] sm:$0xff]  ;;  %2113 = vst [vmem:[#allocation7 + $0xc0] sm:$0xff] %v2736_v11  ;;  %v2739_v20 = vpack.c.bf16 %v96_v18, %v95_v17  ;;  %v98_v21 = vld [vmem:[#allocation2 + $0x1c8] sm:$0xff]  ;;  %v99_v22 = vld [vmem:[#allocation2 + $0x1d0] sm:$0xff] }
  0x3d   :  { %v100_v23 = vld [vmem:[#allocation2 + $0x1d8] sm:$0xff]  ;;  %2114 = vst [vmem:[#allocation7 + $0xc8] sm:$0xff] %v2737_v15  ;;  %2115 = vst [vmem:[#allocation7 + $0xd0] sm:$0xff] %v2738_v16  ;;  %v2740_v24 = vpack.c.bf16 %v98_v21, %v97_v19  ;;  %v101_v26 = vld [vmem:[#allocation2 + $0x1e0] sm:$0xff] }
  0x3e   :  { %v2741_v25 = vpack.c.bf16 %v100_v23, %v99_v22  ;;  %v102_v27 = vld [vmem:[#allocation2 + $0x1e8] sm:$0xff]  ;;  %v103_v28 = vld [vmem:[#allocation2 + $0x1f0] sm:$0xff]  ;;  %2116 = vst [vmem:[#allocation7 + $0xd8] sm:$0xff] %v2739_v20  ;;  %v104_v30 = vld [vmem:[#allocation2 + $0x1f8] sm:$0xff] }
  0x3f   :  { %v2742_v29 = vpack.c.bf16 %v102_v27, %v101_v26  ;;  %v105_v31 = vld [vmem:[#allocation2 + $0x200] sm:$0xff]  ;;  %v106_v32 = vld [vmem:[#allocation2 + $0x208] sm:$0xff]  ;;  %2117 = vst [vmem:[#allocation7 + $0xe0] sm:$0xff] %v2740_v24  ;;  %v2743_v33 = vpack.c.bf16 %v104_v30, %v103_v28  ;;  %v107_v35 = vld [vmem:[#allocation2 + $0x210] sm:$0xff] }
  0x40   :  { %2118 = vst [vmem:[#allocation7 + $0xe8] sm:$0xff] %v2741_v25  ;;  %v2744_v34 = vpack.c.bf16 %v106_v32, %v105_v31  ;;  %v108_v36 = vld [vmem:[#allocation2 + $0x218] sm:$0xff]  ;;  %v109_v37 = vld [vmem:[#allocation2 + $0x220] sm:$0xff]  ;;  %v110_v39 = vld [vmem:[#allocation2 + $0x228] sm:$0xff] }
  0x41   :  { %2119 = vst [vmem:[#allocation7 + $0xf0] sm:$0xff] %v2742_v29  ;;  %v2745_v38 = vpack.c.bf16 %v108_v36, %v107_v35  ;;  %v111_v40 = vld [vmem:[#allocation2 + $0x230] sm:$0xff]  ;;  %v112_v41 = vld [vmem:[#allocation2 + $0x238] sm:$0xff]  ;;  %2120 = vst [vmem:[#allocation7 + $0xf8] sm:$0xff] %v2743_v33  ;;  %v2746_v42 = vpack.c.bf16 %v110_v39, %v109_v37 }
  0x42   :  { %2121 = vst [vmem:[#allocation7 + $0x100] sm:$0xff] %v2744_v34  ;;  %v2747_v43 = vpack.c.bf16 %v112_v41, %v111_v40  ;;  %v113_v44 = vld [vmem:[#allocation2 + $0x240] sm:$0xff]  ;;  %v114_v45 = vld [vmem:[#allocation2 + $0x248] sm:$0xff]  ;;  %v115_v46 = vld [vmem:[#allocation2 + $0x250] sm:$0xff] }
  0x43   :  { %2122 = vst [vmem:[#allocation7 + $0x108] sm:$0xff] %v2745_v38  ;;  %v2748_v47 = vpack.c.bf16 %v114_v45, %v113_v44  ;;  %v116_v48 = vld [vmem:[#allocation2 + $0x258] sm:$0xff]  ;;  %v117_v49 = vld [vmem:[#allocation2 + $0x260] sm:$0xff]  ;;  %v118_v50 = vld [vmem:[#allocation2 + $0x268] sm:$0xff] }
  0x44   :  { %2123 = vst [vmem:[#allocation7 + $0x110] sm:$0xff] %v2746_v42  ;;  %2124 = vst [vmem:[#allocation7 + $0x118] sm:$0xff] %v2747_v43  ;;  %v2749_v51 = vpack.c.bf16 %v116_v48, %v115_v46  ;;  %v2750_v52 = vpack.c.bf16 %v118_v50, %v117_v49  ;;  %v119_v53 = vld [vmem:[#allocation2 + $0x270] sm:$0xff]  ;;  %v120_v54 = vld [vmem:[#allocation2 + $0x278] sm:$0xff] }
  0x45   :  { %v121_v55 = vld [vmem:[#allocation2 + $0x280] sm:$0xff]  ;;  %2125 = vst [vmem:[#allocation7 + $0x120] sm:$0xff] %v2748_v47  ;;  %v2751_v56 = vpack.c.bf16 %v120_v54, %v119_v53  ;;  %v122_v57 = vld [vmem:[#allocation2 + $0x288] sm:$0xff]  ;;  %v123_v58 = vld [vmem:[#allocation2 + $0x290] sm:$0xff] }
  0x46   :  { %v124_v59 = vld [vmem:[#allocation2 + $0x298] sm:$0xff]  ;;  %2126 = vst [vmem:[#allocation7 + $0x128] sm:$0xff] %v2749_v51  ;;  %2127 = vst [vmem:[#allocation7 + $0x130] sm:$0xff] %v2750_v52  ;;  %v2752_v60 = vpack.c.bf16 %v122_v57, %v121_v55  ;;  %v125_v62 = vld [vmem:[#allocation2 + $0x2a0] sm:$0xff] }
  0x47   :  { %v2753_v61 = vpack.c.bf16 %v124_v59, %v123_v58  ;;  %v126_v63 = vld [vmem:[#allocation2 + $0x2a8] sm:$0xff]  ;;  %v127_v0 = vld [vmem:[#allocation2 + $0x2b0] sm:$0xff]  ;;  %2128 = vst [vmem:[#allocation7 + $0x138] sm:$0xff] %v2751_v56  ;;  %v128_v2 = vld [vmem:[#allocation2 + $0x2b8] sm:$0xff] }
  0x48   :  { %v2754_v1 = vpack.c.bf16 %v126_v63, %v125_v62  ;;  %v129_v3 = vld [vmem:[#allocation2 + $0x2c0] sm:$0xff]  ;;  %v130_v4 = vld [vmem:[#allocation2 + $0x2c8] sm:$0xff]  ;;  %2129 = vst [vmem:[#allocation7 + $0x140] sm:$0xff] %v2752_v60  ;;  %v2755_v5 = vpack.c.bf16 %v128_v2, %v127_v0  ;;  %v131_v7 = vld [vmem:[#allocation2 + $0x2d0] sm:$0xff] }
  0x49   :  { %2130 = vst [vmem:[#allocation7 + $0x148] sm:$0xff] %v2753_v61  ;;  %v2756_v6 = vpack.c.bf16 %v130_v4, %v129_v3  ;;  %v132_v8 = vld [vmem:[#allocation2 + $0x2d8] sm:$0xff]  ;;  %v133_v9 = vld [vmem:[#allocation2 + $0x2e0] sm:$0xff]  ;;  %v134_v11 = vld [vmem:[#allocation2 + $0x2e8] sm:$0xff] }
  0x4a   :  { %2131 = vst [vmem:[#allocation7 + $0x150] sm:$0xff] %v2754_v1  ;;  %v2757_v10 = vpack.c.bf16 %v132_v8, %v131_v7  ;;  %v135_v12 = vld [vmem:[#allocation2 + $0x2f0] sm:$0xff]  ;;  %v136_v13 = vld [vmem:[#allocation2 + $0x2f8] sm:$0xff]  ;;  %2132 = vst [vmem:[#allocation7 + $0x158] sm:$0xff] %v2755_v5  ;;  %v2758_v14 = vpack.c.bf16 %v134_v11, %v133_v9 }
  0x4b   :  { %2133 = vst [vmem:[#allocation7 + $0x160] sm:$0xff] %v2756_v6  ;;  %v2759_v15 = vpack.c.bf16 %v136_v13, %v135_v12  ;;  %v137_v16 = vld [vmem:[#allocation2 + $0x300] sm:$0xff]  ;;  %v138_v17 = vld [vmem:[#allocation2 + $0x308] sm:$0xff]  ;;  %v139_v18 = vld [vmem:[#allocation2 + $0x310] sm:$0xff] }
  0x4c   :  { %2134 = vst [vmem:[#allocation7 + $0x168] sm:$0xff] %v2757_v10  ;;  %v2760_v19 = vpack.c.bf16 %v138_v17, %v137_v16  ;;  %v140_v20 = vld [vmem:[#allocation2 + $0x318] sm:$0xff]  ;;  %v141_v21 = vld [vmem:[#allocation2 + $0x320] sm:$0xff]  ;;  %v142_v22 = vld [vmem:[#allocation2 + $0x328] sm:$0xff] }
  0x4d   :  { %2135 = vst [vmem:[#allocation7 + $0x170] sm:$0xff] %v2758_v14  ;;  %2136 = vst [vmem:[#allocation7 + $0x178] sm:$0xff] %v2759_v15  ;;  %v2761_v23 = vpack.c.bf16 %v140_v20, %v139_v18  ;;  %v2762_v24 = vpack.c.bf16 %v142_v22, %v141_v21  ;;  %v143_v25 = vld [vmem:[#allocation2 + $0x330] sm:$0xff]  ;;  %v144_v26 = vld [vmem:[#allocation2 + $0x338] sm:$0xff] }
  0x4e   :  { %v145_v27 = vld [vmem:[#allocation2 + $0x340] sm:$0xff]  ;;  %2137 = vst [vmem:[#allocation7 + $0x180] sm:$0xff] %v2760_v19  ;;  %v2763_v28 = vpack.c.bf16 %v144_v26, %v143_v25  ;;  %v146_v29 = vld [vmem:[#allocation2 + $0x348] sm:$0xff]  ;;  %v147_v30 = vld [vmem:[#allocation2 + $0x350] sm:$0xff] }
  0x4f   :  { %v148_v31 = vld [vmem:[#allocation2 + $0x358] sm:$0xff]  ;;  %2138 = vst [vmem:[#allocation7 + $0x188] sm:$0xff] %v2761_v23  ;;  %2139 = vst [vmem:[#allocation7 + $0x190] sm:$0xff] %v2762_v24  ;;  %v2764_v32 = vpack.c.bf16 %v146_v29, %v145_v27  ;;  %v149_v34 = vld [vmem:[#allocation2 + $0x360] sm:$0xff] }
  0x50   :  { %v2765_v33 = vpack.c.bf16 %v148_v31, %v147_v30  ;;  %v150_v35 = vld [vmem:[#allocation2 + $0x368] sm:$0xff]  ;;  %v151_v36 = vld [vmem:[#allocation2 + $0x370] sm:$0xff]  ;;  %2140 = vst [vmem:[#allocation7 + $0x198] sm:$0xff] %v2763_v28  ;;  %v152_v38 = vld [vmem:[#allocation2 + $0x378] sm:$0xff] }
  0x51   :  { %v2766_v37 = vpack.c.bf16 %v150_v35, %v149_v34  ;;  %v153_v39 = vld [vmem:[#allocation2 + $0x380] sm:$0xff]  ;;  %v154_v40 = vld [vmem:[#allocation2 + $0x388] sm:$0xff]  ;;  %2141 = vst [vmem:[#allocation7 + $0x1a0] sm:$0xff] %v2764_v32  ;;  %v2767_v41 = vpack.c.bf16 %v152_v38, %v151_v36  ;;  %v155_v43 = vld [vmem:[#allocation2 + $0x390] sm:$0xff] }
  0x52   :  { %2142 = vst [vmem:[#allocation7 + $0x1a8] sm:$0xff] %v2765_v33  ;;  %v2768_v42 = vpack.c.bf16 %v154_v40, %v153_v39  ;;  %v156_v44 = vld [vmem:[#allocation2 + $0x398] sm:$0xff]  ;;  %v157_v45 = vld [vmem:[#allocation2 + $0x3a0] sm:$0xff]  ;;  %v158_v47 = vld [vmem:[#allocation2 + $0x3a8] sm:$0xff] }
  0x53   :  { %2143 = vst [vmem:[#allocation7 + $0x1b0] sm:$0xff] %v2766_v37  ;;  %v2769_v46 = vpack.c.bf16 %v156_v44, %v155_v43  ;;  %v159_v48 = vld [vmem:[#allocation2 + $0x3b0] sm:$0xff]  ;;  %v160_v49 = vld [vmem:[#allocation2 + $0x3b8] sm:$0xff]  ;;  %2144 = vst [vmem:[#allocation7 + $0x1b8] sm:$0xff] %v2767_v41  ;;  %v2770_v50 = vpack.c.bf16 %v158_v47, %v157_v45 }
  0x54   :  { %2145 = vst [vmem:[#allocation7 + $0x1c0] sm:$0xff] %v2768_v42  ;;  %v2771_v51 = vpack.c.bf16 %v160_v49, %v159_v48  ;;  %v161_v52 = vld [vmem:[#allocation2 + $0x3c0] sm:$0xff]  ;;  %v162_v53 = vld [vmem:[#allocation2 + $0x3c8] sm:$0xff]  ;;  %v163_v54 = vld [vmem:[#allocation2 + $0x3d0] sm:$0xff] }
  0x55   :  { %2146 = vst [vmem:[#allocation7 + $0x1c8] sm:$0xff] %v2769_v46  ;;  %v2772_v55 = vpack.c.bf16 %v162_v53, %v161_v52  ;;  %v164_v56 = vld [vmem:[#allocation2 + $0x3d8] sm:$0xff]  ;;  %v165_v57 = vld [vmem:[#allocation2 + $0x3e0] sm:$0xff]  ;;  %v166_v58 = vld [vmem:[#allocation2 + $0x3e8] sm:$0xff] }
  0x56   :  { %2147 = vst [vmem:[#allocation7 + $0x1d0] sm:$0xff] %v2770_v50  ;;  %2148 = vst [vmem:[#allocation7 + $0x1d8] sm:$0xff] %v2771_v51  ;;  %v2773_v59 = vpack.c.bf16 %v164_v56, %v163_v54  ;;  %v2774_v60 = vpack.c.bf16 %v166_v58, %v165_v57  ;;  %v167_v61 = vld [vmem:[#allocation2 + $0x3f0] sm:$0xff]  ;;  %v168_v62 = vld [vmem:[#allocation2 + $0x3f8] sm:$0xff] }
  0x57   :  { %v169_v63 = vld [vmem:[#allocation2 + $0x400] sm:$0xff]  ;;  %2149 = vst [vmem:[#allocation7 + $0x1e0] sm:$0xff] %v2772_v55  ;;  %v2775_v0 = vpack.c.bf16 %v168_v62, %v167_v61  ;;  %v170_v1 = vld [vmem:[#allocation2 + $0x408] sm:$0xff]  ;;  %v171_v2 = vld [vmem:[#allocation2 + $0x410] sm:$0xff] }
  0x58   :  { %v172_v3 = vld [vmem:[#allocation2 + $0x418] sm:$0xff]  ;;  %2150 = vst [vmem:[#allocation7 + $0x1e8] sm:$0xff] %v2773_v59  ;;  %2151 = vst [vmem:[#allocation7 + $0x1f0] sm:$0xff] %v2774_v60  ;;  %v2776_v4 = vpack.c.bf16 %v170_v1, %v169_v63  ;;  %v173_v6 = vld [vmem:[#allocation2 + $0x420] sm:$0xff] }
  0x59   :  { %v2777_v5 = vpack.c.bf16 %v172_v3, %v171_v2  ;;  %v174_v7 = vld [vmem:[#allocation2 + $0x428] sm:$0xff]  ;;  %v175_v8 = vld [vmem:[#allocation2 + $0x430] sm:$0xff]  ;;  %2152 = vst [vmem:[#allocation7 + $0x1f8] sm:$0xff] %v2775_v0  ;;  %v176_v10 = vld [vmem:[#allocation2 + $0x438] sm:$0xff] }
  0x5a   :  { %v2778_v9 = vpack.c.bf16 %v174_v7, %v173_v6  ;;  %v177_v11 = vld [vmem:[#allocation2 + $0x440] sm:$0xff]  ;;  %v178_v12 = vld [vmem:[#allocation2 + $0x448] sm:$0xff]  ;;  %2153 = vst [vmem:[#allocation7 + $0x200] sm:$0xff] %v2776_v4  ;;  %v2779_v13 = vpack.c.bf16 %v176_v10, %v175_v8  ;;  %v179_v15 = vld [vmem:[#allocation2 + $0x450] sm:$0xff] }
  0x5b   :  { %2154 = vst [vmem:[#allocation7 + $0x208] sm:$0xff] %v2777_v5  ;;  %v2780_v14 = vpack.c.bf16 %v178_v12, %v177_v11  ;;  %v180_v16 = vld [vmem:[#allocation2 + $0x458] sm:$0xff]  ;;  %v181_v17 = vld [vmem:[#allocation2 + $0x460] sm:$0xff]  ;;  %v182_v19 = vld [vmem:[#allocation2 + $0x468] sm:$0xff] }
  0x5c   :  { %2155 = vst [vmem:[#allocation7 + $0x210] sm:$0xff] %v2778_v9  ;;  %v2781_v18 = vpack.c.bf16 %v180_v16, %v179_v15  ;;  %v183_v20 = vld [vmem:[#allocation2 + $0x470] sm:$0xff]  ;;  %v184_v21 = vld [vmem:[#allocation2 + $0x478] sm:$0xff]  ;;  %2156 = vst [vmem:[#allocation7 + $0x218] sm:$0xff] %v2779_v13  ;;  %v2782_v22 = vpack.c.bf16 %v182_v19, %v181_v17 }
  0x5d   :  { %2157 = vst [vmem:[#allocation7 + $0x220] sm:$0xff] %v2780_v14  ;;  %v2783_v23 = vpack.c.bf16 %v184_v21, %v183_v20  ;;  %v185_v24 = vld [vmem:[#allocation2 + $0x480] sm:$0xff]  ;;  %v186_v25 = vld [vmem:[#allocation2 + $0x488] sm:$0xff]  ;;  %v187_v26 = vld [vmem:[#allocation2 + $0x490] sm:$0xff] }
  0x5e   :  { %2158 = vst [vmem:[#allocation7 + $0x228] sm:$0xff] %v2781_v18  ;;  %v2784_v27 = vpack.c.bf16 %v186_v25, %v185_v24  ;;  %v188_v28 = vld [vmem:[#allocation2 + $0x498] sm:$0xff]  ;;  %v189_v29 = vld [vmem:[#allocation2 + $0x4a0] sm:$0xff]  ;;  %v190_v30 = vld [vmem:[#allocation2 + $0x4a8] sm:$0xff] }
  0x5f   :  { %2159 = vst [vmem:[#allocation7 + $0x230] sm:$0xff] %v2782_v22  ;;  %2160 = vst [vmem:[#allocation7 + $0x238] sm:$0xff] %v2783_v23  ;;  %v2785_v31 = vpack.c.bf16 %v188_v28, %v187_v26  ;;  %v2786_v32 = vpack.c.bf16 %v190_v30, %v189_v29  ;;  %v191_v33 = vld [vmem:[#allocation2 + $0x4b0] sm:$0xff]  ;;  %v192_v34 = vld [vmem:[#allocation2 + $0x4b8] sm:$0xff] }
  0x60   :  { %v193_v35 = vld [vmem:[#allocation2 + $0x4c0] sm:$0xff]  ;;  %2161 = vst [vmem:[#allocation7 + $0x240] sm:$0xff] %v2784_v27  ;;  %v2787_v36 = vpack.c.bf16 %v192_v34, %v191_v33  ;;  %v194_v37 = vld [vmem:[#allocation2 + $0x4c8] sm:$0xff]  ;;  %v195_v38 = vld [vmem:[#allocation2 + $0x4d0] sm:$0xff] }
  0x61   :  { %v196_v39 = vld [vmem:[#allocation2 + $0x4d8] sm:$0xff]  ;;  %2162 = vst [vmem:[#allocation7 + $0x248] sm:$0xff] %v2785_v31  ;;  %2163 = vst [vmem:[#allocation7 + $0x250] sm:$0xff] %v2786_v32  ;;  %v2788_v40 = vpack.c.bf16 %v194_v37, %v193_v35  ;;  %v197_v42 = vld [vmem:[#allocation2 + $0x4e0] sm:$0xff] }
  0x62   :  { %v2789_v41 = vpack.c.bf16 %v196_v39, %v195_v38  ;;  %v198_v43 = vld [vmem:[#allocation2 + $0x4e8] sm:$0xff]  ;;  %v199_v44 = vld [vmem:[#allocation2 + $0x4f0] sm:$0xff]  ;;  %2164 = vst [vmem:[#allocation7 + $0x258] sm:$0xff] %v2787_v36  ;;  %v200_v46 = vld [vmem:[#allocation2 + $0x4f8] sm:$0xff] }
  0x63   :  { %v2790_v45 = vpack.c.bf16 %v198_v43, %v197_v42  ;;  %v201_v47 = vld [vmem:[#allocation2 + $0x500] sm:$0xff]  ;;  %v202_v48 = vld [vmem:[#allocation2 + $0x508] sm:$0xff]  ;;  %2165 = vst [vmem:[#allocation7 + $0x260] sm:$0xff] %v2788_v40  ;;  %v2791_v49 = vpack.c.bf16 %v200_v46, %v199_v44  ;;  %v203_v51 = vld [vmem:[#allocation2 + $0x510] sm:$0xff] }
  0x64   :  { %2166 = vst [vmem:[#allocation7 + $0x268] sm:$0xff] %v2789_v41  ;;  %v2792_v50 = vpack.c.bf16 %v202_v48, %v201_v47  ;;  %v204_v52 = vld [vmem:[#allocation2 + $0x518] sm:$0xff]  ;;  %v205_v53 = vld [vmem:[#allocation2 + $0x520] sm:$0xff]  ;;  %v206_v55 = vld [vmem:[#allocation2 + $0x528] sm:$0xff] }
  0x65   :  { %2167 = vst [vmem:[#allocation7 + $0x270] sm:$0xff] %v2790_v45  ;;  %v2793_v54 = vpack.c.bf16 %v204_v52, %v203_v51  ;;  %v207_v56 = vld [vmem:[#allocation2 + $0x530] sm:$0xff]  ;;  %v208_v57 = vld [vmem:[#allocation2 + $0x538] sm:$0xff]  ;;  %2168 = vst [vmem:[#allocation7 + $0x278] sm:$0xff] %v2791_v49  ;;  %v2794_v58 = vpack.c.bf16 %v206_v55, %v205_v53 }
  0x66   :  { %2169 = vst [vmem:[#allocation7 + $0x280] sm:$0xff] %v2792_v50  ;;  %v2795_v59 = vpack.c.bf16 %v208_v57, %v207_v56  ;;  %v209_v60 = vld [vmem:[#allocation2 + $0x540] sm:$0xff]  ;;  %v210_v61 = vld [vmem:[#allocation2 + $0x548] sm:$0xff]  ;;  %v211_v62 = vld [vmem:[#allocation2 + $0x550] sm:$0xff] }
  0x67   :  { %2170 = vst [vmem:[#allocation7 + $0x288] sm:$0xff] %v2793_v54  ;;  %v2796_v63 = vpack.c.bf16 %v210_v61, %v209_v60  ;;  %v212_v0 = vld [vmem:[#allocation2 + $0x558] sm:$0xff]  ;;  %v213_v1 = vld [vmem:[#allocation2 + $0x560] sm:$0xff]  ;;  %v214_v2 = vld [vmem:[#allocation2 + $0x568] sm:$0xff] }
  0x68   :  { %2171 = vst [vmem:[#allocation7 + $0x290] sm:$0xff] %v2794_v58  ;;  %2172 = vst [vmem:[#allocation7 + $0x298] sm:$0xff] %v2795_v59  ;;  %v2797_v3 = vpack.c.bf16 %v212_v0, %v211_v62  ;;  %v2798_v4 = vpack.c.bf16 %v214_v2, %v213_v1  ;;  %v215_v5 = vld [vmem:[#allocation2 + $0x570] sm:$0xff]  ;;  %v216_v6 = vld [vmem:[#allocation2 + $0x578] sm:$0xff] }
  0x69   :  { %v217_v7 = vld [vmem:[#allocation2 + $0x580] sm:$0xff]  ;;  %2173 = vst [vmem:[#allocation7 + $0x2a0] sm:$0xff] %v2796_v63  ;;  %v2799_v8 = vpack.c.bf16 %v216_v6, %v215_v5  ;;  %v218_v9 = vld [vmem:[#allocation2 + $0x588] sm:$0xff]  ;;  %v219_v10 = vld [vmem:[#allocation2 + $0x590] sm:$0xff] }
  0x6a   :  { %v220_v11 = vld [vmem:[#allocation2 + $0x598] sm:$0xff]  ;;  %2174 = vst [vmem:[#allocation7 + $0x2a8] sm:$0xff] %v2797_v3  ;;  %2175 = vst [vmem:[#allocation7 + $0x2b0] sm:$0xff] %v2798_v4  ;;  %v2800_v12 = vpack.c.bf16 %v218_v9, %v217_v7  ;;  %v221_v14 = vld [vmem:[#allocation2 + $0x5a0] sm:$0xff] }
  0x6b   :  { %v2801_v13 = vpack.c.bf16 %v220_v11, %v219_v10  ;;  %v222_v15 = vld [vmem:[#allocation2 + $0x5a8] sm:$0xff]  ;;  %v223_v16 = vld [vmem:[#allocation2 + $0x5b0] sm:$0xff]  ;;  %2176 = vst [vmem:[#allocation7 + $0x2b8] sm:$0xff] %v2799_v8  ;;  %v224_v18 = vld [vmem:[#allocation2 + $0x5b8] sm:$0xff] }
  0x6c   :  { %v2802_v17 = vpack.c.bf16 %v222_v15, %v221_v14  ;;  %v225_v19 = vld [vmem:[#allocation2 + $0x5c0] sm:$0xff]  ;;  %v226_v20 = vld [vmem:[#allocation2 + $0x5c8] sm:$0xff]  ;;  %2177 = vst [vmem:[#allocation7 + $0x2c0] sm:$0xff] %v2800_v12  ;;  %v2803_v21 = vpack.c.bf16 %v224_v18, %v223_v16  ;;  %v227_v23 = vld [vmem:[#allocation2 + $0x5d0] sm:$0xff] }
  0x6d   :  { %2178 = vst [vmem:[#allocation7 + $0x2c8] sm:$0xff] %v2801_v13  ;;  %v2804_v22 = vpack.c.bf16 %v226_v20, %v225_v19  ;;  %v228_v24 = vld [vmem:[#allocation2 + $0x5d8] sm:$0xff]  ;;  %v229_v25 = vld [vmem:[#allocation2 + $0x5e0] sm:$0xff]  ;;  %v230_v27 = vld [vmem:[#allocation2 + $0x5e8] sm:$0xff] }
  0x6e   :  { %2179 = vst [vmem:[#allocation7 + $0x2d0] sm:$0xff] %v2802_v17  ;;  %v2805_v26 = vpack.c.bf16 %v228_v24, %v227_v23  ;;  %v231_v28 = vld [vmem:[#allocation2 + $0x5f0] sm:$0xff]  ;;  %v232_v29 = vld [vmem:[#allocation2 + $0x5f8] sm:$0xff]  ;;  %2180 = vst [vmem:[#allocation7 + $0x2d8] sm:$0xff] %v2803_v21  ;;  %v2806_v30 = vpack.c.bf16 %v230_v27, %v229_v25 }
  0x6f   :  { %2181 = vst [vmem:[#allocation7 + $0x2e0] sm:$0xff] %v2804_v22  ;;  %v2807_v31 = vpack.c.bf16 %v232_v29, %v231_v28  ;;  %v233_v32 = vld [vmem:[#allocation2 + $0x600] sm:$0xff]  ;;  %v234_v33 = vld [vmem:[#allocation2 + $0x608] sm:$0xff]  ;;  %v235_v34 = vld [vmem:[#allocation2 + $0x610] sm:$0xff] }
  0x70   :  { %2182 = vst [vmem:[#allocation7 + $0x2e8] sm:$0xff] %v2805_v26  ;;  %v2808_v35 = vpack.c.bf16 %v234_v33, %v233_v32  ;;  %v236_v36 = vld [vmem:[#allocation2 + $0x618] sm:$0xff]  ;;  %v237_v37 = vld [vmem:[#allocation2 + $0x620] sm:$0xff]  ;;  %v238_v38 = vld [vmem:[#allocation2 + $0x628] sm:$0xff] }
  0x71   :  { %2183 = vst [vmem:[#allocation7 + $0x2f0] sm:$0xff] %v2806_v30  ;;  %2184 = vst [vmem:[#allocation7 + $0x2f8] sm:$0xff] %v2807_v31  ;;  %v2809_v39 = vpack.c.bf16 %v236_v36, %v235_v34  ;;  %v2810_v40 = vpack.c.bf16 %v238_v38, %v237_v37  ;;  %v239_v41 = vld [vmem:[#allocation2 + $0x630] sm:$0xff]  ;;  %v240_v42 = vld [vmem:[#allocation2 + $0x638] sm:$0xff] }
  0x72   :  { %v241_v43 = vld [vmem:[#allocation2 + $0x640] sm:$0xff]  ;;  %2185 = vst [vmem:[#allocation7 + $0x300] sm:$0xff] %v2808_v35  ;;  %v2811_v44 = vpack.c.bf16 %v240_v42, %v239_v41  ;;  %v242_v45 = vld [vmem:[#allocation2 + $0x648] sm:$0xff]  ;;  %v243_v46 = vld [vmem:[#allocation2 + $0x650] sm:$0xff] }
  0x73   :  { %v244_v47 = vld [vmem:[#allocation2 + $0x658] sm:$0xff]  ;;  %2186 = vst [vmem:[#allocation7 + $0x308] sm:$0xff] %v2809_v39  ;;  %2187 = vst [vmem:[#allocation7 + $0x310] sm:$0xff] %v2810_v40  ;;  %v2812_v48 = vpack.c.bf16 %v242_v45, %v241_v43  ;;  %v245_v50 = vld [vmem:[#allocation2 + $0x660] sm:$0xff] }
  0x74   :  { %v2813_v49 = vpack.c.bf16 %v244_v47, %v243_v46  ;;  %v246_v51 = vld [vmem:[#allocation2 + $0x668] sm:$0xff]  ;;  %v247_v52 = vld [vmem:[#allocation2 + $0x670] sm:$0xff]  ;;  %2188 = vst [vmem:[#allocation7 + $0x318] sm:$0xff] %v2811_v44  ;;  %v248_v54 = vld [vmem:[#allocation2 + $0x678] sm:$0xff] }
  0x75   :  { %v2814_v53 = vpack.c.bf16 %v246_v51, %v245_v50  ;;  %v249_v55 = vld [vmem:[#allocation2 + $0x680] sm:$0xff]  ;;  %v250_v56 = vld [vmem:[#allocation2 + $0x688] sm:$0xff]  ;;  %2189 = vst [vmem:[#allocation7 + $0x320] sm:$0xff] %v2812_v48  ;;  %v2815_v57 = vpack.c.bf16 %v248_v54, %v247_v52  ;;  %v251_v59 = vld [vmem:[#allocation2 + $0x690] sm:$0xff] }
  0x76   :  { %2190 = vst [vmem:[#allocation7 + $0x328] sm:$0xff] %v2813_v49  ;;  %v2816_v58 = vpack.c.bf16 %v250_v56, %v249_v55  ;;  %v252_v60 = vld [vmem:[#allocation2 + $0x698] sm:$0xff]  ;;  %v253_v61 = vld [vmem:[#allocation2 + $0x6a0] sm:$0xff]  ;;  %v254_v63 = vld [vmem:[#allocation2 + $0x6a8] sm:$0xff] }
  0x77   :  { %2191 = vst [vmem:[#allocation7 + $0x330] sm:$0xff] %v2814_v53  ;;  %v2817_v62 = vpack.c.bf16 %v252_v60, %v251_v59  ;;  %v255_v0 = vld [vmem:[#allocation2 + $0x6b0] sm:$0xff]  ;;  %v256_v1 = vld [vmem:[#allocation2 + $0x6b8] sm:$0xff]  ;;  %2192 = vst [vmem:[#allocation7 + $0x338] sm:$0xff] %v2815_v57  ;;  %v2818_v2 = vpack.c.bf16 %v254_v63, %v253_v61 }
  0x78   :  { %2193 = vst [vmem:[#allocation7 + $0x340] sm:$0xff] %v2816_v58  ;;  %v2819_v3 = vpack.c.bf16 %v256_v1, %v255_v0  ;;  %v257_v4 = vld [vmem:[#allocation2 + $0x6c0] sm:$0xff]  ;;  %v258_v5 = vld [vmem:[#allocation2 + $0x6c8] sm:$0xff]  ;;  %v259_v6 = vld [vmem:[#allocation2 + $0x6d0] sm:$0xff] }
  0x79   :  { %2194 = vst [vmem:[#allocation7 + $0x348] sm:$0xff] %v2817_v62  ;;  %v2820_v7 = vpack.c.bf16 %v258_v5, %v257_v4  ;;  %v260_v8 = vld [vmem:[#allocation2 + $0x6d8] sm:$0xff]  ;;  %v261_v9 = vld [vmem:[#allocation2 + $0x6e0] sm:$0xff]  ;;  %v262_v10 = vld [vmem:[#allocation2 + $0x6e8] sm:$0xff] }
  0x7a   :  { %2195 = vst [vmem:[#allocation7 + $0x350] sm:$0xff] %v2818_v2  ;;  %2196 = vst [vmem:[#allocation7 + $0x358] sm:$0xff] %v2819_v3  ;;  %v2821_v11 = vpack.c.bf16 %v260_v8, %v259_v6  ;;  %v2822_v12 = vpack.c.bf16 %v262_v10, %v261_v9  ;;  %v263_v13 = vld [vmem:[#allocation2 + $0x6f0] sm:$0xff]  ;;  %v264_v14 = vld [vmem:[#allocation2 + $0x6f8] sm:$0xff] }
  0x7b   :  { %v265_v15 = vld [vmem:[#allocation2 + $0x700] sm:$0xff]  ;;  %2197 = vst [vmem:[#allocation7 + $0x360] sm:$0xff] %v2820_v7  ;;  %v2823_v16 = vpack.c.bf16 %v264_v14, %v263_v13  ;;  %v266_v17 = vld [vmem:[#allocation2 + $0x708] sm:$0xff]  ;;  %v267_v18 = vld [vmem:[#allocation2 + $0x710] sm:$0xff] }
  0x7c   :  { %v268_v19 = vld [vmem:[#allocation2 + $0x718] sm:$0xff]  ;;  %2198 = vst [vmem:[#allocation7 + $0x368] sm:$0xff] %v2821_v11  ;;  %2199 = vst [vmem:[#allocation7 + $0x370] sm:$0xff] %v2822_v12  ;;  %v2824_v20 = vpack.c.bf16 %v266_v17, %v265_v15  ;;  %v269_v22 = vld [vmem:[#allocation2 + $0x720] sm:$0xff] }
  0x7d   :  { %v2825_v21 = vpack.c.bf16 %v268_v19, %v267_v18  ;;  %v270_v23 = vld [vmem:[#allocation2 + $0x728] sm:$0xff]  ;;  %v271_v24 = vld [vmem:[#allocation2 + $0x730] sm:$0xff]  ;;  %2200 = vst [vmem:[#allocation7 + $0x378] sm:$0xff] %v2823_v16  ;;  %v272_v26 = vld [vmem:[#allocation2 + $0x738] sm:$0xff] }
  0x7e   :  { %v2826_v25 = vpack.c.bf16 %v270_v23, %v269_v22  ;;  %v273_v27 = vld [vmem:[#allocation2 + $0x740] sm:$0xff]  ;;  %v274_v28 = vld [vmem:[#allocation2 + $0x748] sm:$0xff]  ;;  %2201 = vst [vmem:[#allocation7 + $0x380] sm:$0xff] %v2824_v20  ;;  %v2827_v29 = vpack.c.bf16 %v272_v26, %v271_v24  ;;  %v275_v31 = vld [vmem:[#allocation2 + $0x750] sm:$0xff] }
  0x7f   :  { %2202 = vst [vmem:[#allocation7 + $0x388] sm:$0xff] %v2825_v21  ;;  %v2828_v30 = vpack.c.bf16 %v274_v28, %v273_v27  ;;  %v276_v32 = vld [vmem:[#allocation2 + $0x758] sm:$0xff]  ;;  %v277_v33 = vld [vmem:[#allocation2 + $0x760] sm:$0xff]  ;;  %v278_v35 = vld [vmem:[#allocation2 + $0x768] sm:$0xff] }
  0x80   :  { %2203 = vst [vmem:[#allocation7 + $0x390] sm:$0xff] %v2826_v25  ;;  %v2829_v34 = vpack.c.bf16 %v276_v32, %v275_v31  ;;  %v279_v36 = vld [vmem:[#allocation2 + $0x770] sm:$0xff]  ;;  %v280_v37 = vld [vmem:[#allocation2 + $0x778] sm:$0xff]  ;;  %2204 = vst [vmem:[#allocation7 + $0x398] sm:$0xff] %v2827_v29  ;;  %v2830_v38 = vpack.c.bf16 %v278_v35, %v277_v33 }
  0x81   :  { %2205 = vst [vmem:[#allocation7 + $0x3a0] sm:$0xff] %v2828_v30  ;;  %v2831_v39 = vpack.c.bf16 %v280_v37, %v279_v36  ;;  %v281_v40 = vld [vmem:[#allocation2 + $0x780] sm:$0xff]  ;;  %v282_v41 = vld [vmem:[#allocation2 + $0x788] sm:$0xff]  ;;  %v283_v42 = vld [vmem:[#allocation2 + $0x790] sm:$0xff] }
  0x82   :  { %2206 = vst [vmem:[#allocation7 + $0x3a8] sm:$0xff] %v2829_v34  ;;  %v2832_v43 = vpack.c.bf16 %v282_v41, %v281_v40  ;;  %v284_v44 = vld [vmem:[#allocation2 + $0x798] sm:$0xff]  ;;  %v285_v45 = vld [vmem:[#allocation2 + $0x7a0] sm:$0xff]  ;;  %v286_v46 = vld [vmem:[#allocation2 + $0x7a8] sm:$0xff] }
  0x83   :  { %2207 = vst [vmem:[#allocation7 + $0x3b0] sm:$0xff] %v2830_v38  ;;  %2208 = vst [vmem:[#allocation7 + $0x3b8] sm:$0xff] %v2831_v39  ;;  %v2833_v47 = vpack.c.bf16 %v284_v44, %v283_v42  ;;  %v2834_v48 = vpack.c.bf16 %v286_v46, %v285_v45  ;;  %v287_v49 = vld [vmem:[#allocation2 + $0x7b0] sm:$0xff]  ;;  %v288_v50 = vld [vmem:[#allocation2 + $0x7b8] sm:$0xff] }
  0x84   :  { %v289_v51 = vld [vmem:[#allocation2 + $0x7c0] sm:$0xff]  ;;  %2209 = vst [vmem:[#allocation7 + $0x3c0] sm:$0xff] %v2832_v43  ;;  %v2835_v52 = vpack.c.bf16 %v288_v50, %v287_v49  ;;  %v290_v53 = vld [vmem:[#allocation2 + $0x7c8] sm:$0xff]  ;;  %v291_v54 = vld [vmem:[#allocation2 + $0x7d0] sm:$0xff] }
  0x85   :  { %v292_v55 = vld [vmem:[#allocation2 + $0x7d8] sm:$0xff]  ;;  %2210 = vst [vmem:[#allocation7 + $0x3c8] sm:$0xff] %v2833_v47  ;;  %2211 = vst [vmem:[#allocation7 + $0x3d0] sm:$0xff] %v2834_v48  ;;  %v2836_v56 = vpack.c.bf16 %v290_v53, %v289_v51  ;;  %v293_v58 = vld [vmem:[#allocation2 + $0x7e0] sm:$0xff] }
  0x86   :  { %v2837_v57 = vpack.c.bf16 %v292_v55, %v291_v54  ;;  %v294_v59 = vld [vmem:[#allocation2 + $0x7e8] sm:$0xff]  ;;  %v295_v60 = vld [vmem:[#allocation2 + $0x7f0] sm:$0xff]  ;;  %2212 = vst [vmem:[#allocation7 + $0x3d8] sm:$0xff] %v2835_v52  ;;  %v296_v62 = vld [vmem:[#allocation2 + $0x7f8] sm:$0xff] }
  0x87   :  { %v2838_v61 = vpack.c.bf16 %v294_v59, %v293_v58  ;;  %v297_v63 = vld [vmem:[#allocation2 + $0x800] sm:$0xff]  ;;  %v298_v0 = vld [vmem:[#allocation2 + $0x808] sm:$0xff]  ;;  %2213 = vst [vmem:[#allocation7 + $0x3e0] sm:$0xff] %v2836_v56  ;;  %v2839_v1 = vpack.c.bf16 %v296_v62, %v295_v60  ;;  %v299_v3 = vld [vmem:[#allocation2 + $0x810] sm:$0xff] }
  0x88   :  { %2214 = vst [vmem:[#allocation7 + $0x3e8] sm:$0xff] %v2837_v57  ;;  %v2840_v2 = vpack.c.bf16 %v298_v0, %v297_v63  ;;  %v300_v4 = vld [vmem:[#allocation2 + $0x818] sm:$0xff]  ;;  %v301_v5 = vld [vmem:[#allocation2 + $0x820] sm:$0xff]  ;;  %v302_v7 = vld [vmem:[#allocation2 + $0x828] sm:$0xff] }
  0x89   :  { %2215 = vst [vmem:[#allocation7 + $0x3f0] sm:$0xff] %v2838_v61  ;;  %v2841_v6 = vpack.c.bf16 %v300_v4, %v299_v3  ;;  %v303_v8 = vld [vmem:[#allocation2 + $0x830] sm:$0xff]  ;;  %v304_v9 = vld [vmem:[#allocation2 + $0x838] sm:$0xff]  ;;  %2216 = vst [vmem:[#allocation7 + $0x3f8] sm:$0xff] %v2839_v1  ;;  %v2842_v10 = vpack.c.bf16 %v302_v7, %v301_v5 }
  0x8a   :  { %2217 = vst [vmem:[#allocation7 + $0x400] sm:$0xff] %v2840_v2  ;;  %v2843_v11 = vpack.c.bf16 %v304_v9, %v303_v8  ;;  %v305_v12 = vld [vmem:[#allocation2 + $0x840] sm:$0xff]  ;;  %v306_v13 = vld [vmem:[#allocation2 + $0x848] sm:$0xff]  ;;  %v307_v14 = vld [vmem:[#allocation2 + $0x850] sm:$0xff] }
  0x8b   :  { %2218 = vst [vmem:[#allocation7 + $0x408] sm:$0xff] %v2841_v6  ;;  %v2844_v15 = vpack.c.bf16 %v306_v13, %v305_v12  ;;  %v308_v16 = vld [vmem:[#allocation2 + $0x858] sm:$0xff]  ;;  %v309_v17 = vld [vmem:[#allocation2 + $0x860] sm:$0xff]  ;;  %v310_v18 = vld [vmem:[#allocation2 + $0x868] sm:$0xff] }
  0x8c   :  { %2219 = vst [vmem:[#allocation7 + $0x410] sm:$0xff] %v2842_v10  ;;  %2220 = vst [vmem:[#allocation7 + $0x418] sm:$0xff] %v2843_v11  ;;  %v2845_v19 = vpack.c.bf16 %v308_v16, %v307_v14  ;;  %v2846_v20 = vpack.c.bf16 %v310_v18, %v309_v17  ;;  %v311_v21 = vld [vmem:[#allocation2 + $0x870] sm:$0xff]  ;;  %v312_v22 = vld [vmem:[#allocation2 + $0x878] sm:$0xff] }
  0x8d   :  { %v313_v23 = vld [vmem:[#allocation2 + $0x880] sm:$0xff]  ;;  %2221 = vst [vmem:[#allocation7 + $0x420] sm:$0xff] %v2844_v15  ;;  %v2847_v24 = vpack.c.bf16 %v312_v22, %v311_v21  ;;  %v314_v25 = vld [vmem:[#allocation2 + $0x888] sm:$0xff]  ;;  %v315_v26 = vld [vmem:[#allocation2 + $0x890] sm:$0xff] }
  0x8e   :  { %v316_v27 = vld [vmem:[#allocation2 + $0x898] sm:$0xff]  ;;  %2222 = vst [vmem:[#allocation7 + $0x428] sm:$0xff] %v2845_v19  ;;  %2223 = vst [vmem:[#allocation7 + $0x430] sm:$0xff] %v2846_v20  ;;  %v2848_v28 = vpack.c.bf16 %v314_v25, %v313_v23  ;;  %v317_v30 = vld [vmem:[#allocation2 + $0x8a0] sm:$0xff] }
  0x8f   :  { %v2849_v29 = vpack.c.bf16 %v316_v27, %v315_v26  ;;  %v318_v31 = vld [vmem:[#allocation2 + $0x8a8] sm:$0xff]  ;;  %v319_v32 = vld [vmem:[#allocation2 + $0x8b0] sm:$0xff]  ;;  %2224 = vst [vmem:[#allocation7 + $0x438] sm:$0xff] %v2847_v24  ;;  %v320_v34 = vld [vmem:[#allocation2 + $0x8b8] sm:$0xff] }
  0x90   :  { %v2850_v33 = vpack.c.bf16 %v318_v31, %v317_v30  ;;  %v321_v35 = vld [vmem:[#allocation2 + $0x8c0] sm:$0xff]  ;;  %v322_v36 = vld [vmem:[#allocation2 + $0x8c8] sm:$0xff]  ;;  %2225 = vst [vmem:[#allocation7 + $0x440] sm:$0xff] %v2848_v28  ;;  %v2851_v37 = vpack.c.bf16 %v320_v34, %v319_v32  ;;  %v323_v39 = vld [vmem:[#allocation2 + $0x8d0] sm:$0xff] }
  0x91   :  { %2226 = vst [vmem:[#allocation7 + $0x448] sm:$0xff] %v2849_v29  ;;  %v2852_v38 = vpack.c.bf16 %v322_v36, %v321_v35  ;;  %v324_v40 = vld [vmem:[#allocation2 + $0x8d8] sm:$0xff]  ;;  %v325_v41 = vld [vmem:[#allocation2 + $0x8e0] sm:$0xff]  ;;  %v326_v43 = vld [vmem:[#allocation2 + $0x8e8] sm:$0xff] }
  0x92   :  { %2227 = vst [vmem:[#allocation7 + $0x450] sm:$0xff] %v2850_v33  ;;  %v2853_v42 = vpack.c.bf16 %v324_v40, %v323_v39  ;;  %v327_v44 = vld [vmem:[#allocation2 + $0x8f0] sm:$0xff]  ;;  %v328_v45 = vld [vmem:[#allocation2 + $0x8f8] sm:$0xff]  ;;  %2228 = vst [vmem:[#allocation7 + $0x458] sm:$0xff] %v2851_v37  ;;  %v2854_v46 = vpack.c.bf16 %v326_v43, %v325_v41 }
  0x93   :  { %2229 = vst [vmem:[#allocation7 + $0x460] sm:$0xff] %v2852_v38  ;;  %v2855_v47 = vpack.c.bf16 %v328_v45, %v327_v44  ;;  %v329_v48 = vld [vmem:[#allocation2 + $0x900] sm:$0xff]  ;;  %v330_v49 = vld [vmem:[#allocation2 + $0x908] sm:$0xff]  ;;  %v331_v50 = vld [vmem:[#allocation2 + $0x910] sm:$0xff] }
  0x94   :  { %2230 = vst [vmem:[#allocation7 + $0x468] sm:$0xff] %v2853_v42  ;;  %v2856_v51 = vpack.c.bf16 %v330_v49, %v329_v48  ;;  %v332_v52 = vld [vmem:[#allocation2 + $0x918] sm:$0xff]  ;;  %v333_v53 = vld [vmem:[#allocation2 + $0x920] sm:$0xff]  ;;  %v334_v54 = vld [vmem:[#allocation2 + $0x928] sm:$0xff] }
  0x95   :  { %2231 = vst [vmem:[#allocation7 + $0x470] sm:$0xff] %v2854_v46  ;;  %2232 = vst [vmem:[#allocation7 + $0x478] sm:$0xff] %v2855_v47  ;;  %v2857_v55 = vpack.c.bf16 %v332_v52, %v331_v50  ;;  %v2858_v56 = vpack.c.bf16 %v334_v54, %v333_v53  ;;  %v335_v57 = vld [vmem:[#allocation2 + $0x930] sm:$0xff]  ;;  %v336_v58 = vld [vmem:[#allocation2 + $0x938] sm:$0xff] }
  0x96   :  { %v337_v59 = vld [vmem:[#allocation2 + $0x940] sm:$0xff]  ;;  %2233 = vst [vmem:[#allocation7 + $0x480] sm:$0xff] %v2856_v51  ;;  %v2859_v60 = vpack.c.bf16 %v336_v58, %v335_v57  ;;  %v338_v61 = vld [vmem:[#allocation2 + $0x948] sm:$0xff]  ;;  %v339_v62 = vld [vmem:[#allocation2 + $0x950] sm:$0xff] }
  0x97   :  { %v340_v63 = vld [vmem:[#allocation2 + $0x958] sm:$0xff]  ;;  %2234 = vst [vmem:[#allocation7 + $0x488] sm:$0xff] %v2857_v55  ;;  %2235 = vst [vmem:[#allocation7 + $0x490] sm:$0xff] %v2858_v56  ;;  %v2860_v0 = vpack.c.bf16 %v338_v61, %v337_v59  ;;  %v341_v2 = vld [vmem:[#allocation2 + $0x960] sm:$0xff] }
  0x98   :  { %v2861_v1 = vpack.c.bf16 %v340_v63, %v339_v62  ;;  %v342_v3 = vld [vmem:[#allocation2 + $0x968] sm:$0xff]  ;;  %v343_v4 = vld [vmem:[#allocation2 + $0x970] sm:$0xff]  ;;  %2236 = vst [vmem:[#allocation7 + $0x498] sm:$0xff] %v2859_v60  ;;  %v344_v6 = vld [vmem:[#allocation2 + $0x978] sm:$0xff] }
  0x99   :  { %v2862_v5 = vpack.c.bf16 %v342_v3, %v341_v2  ;;  %v345_v7 = vld [vmem:[#allocation2 + $0x980] sm:$0xff]  ;;  %v346_v8 = vld [vmem:[#allocation2 + $0x988] sm:$0xff]  ;;  %2237 = vst [vmem:[#allocation7 + $0x4a0] sm:$0xff] %v2860_v0  ;;  %v2863_v9 = vpack.c.bf16 %v344_v6, %v343_v4  ;;  %v347_v11 = vld [vmem:[#allocation2 + $0x990] sm:$0xff] }
  0x9a   :  { %2238 = vst [vmem:[#allocation7 + $0x4a8] sm:$0xff] %v2861_v1  ;;  %v2864_v10 = vpack.c.bf16 %v346_v8, %v345_v7  ;;  %v348_v12 = vld [vmem:[#allocation2 + $0x998] sm:$0xff]  ;;  %v349_v13 = vld [vmem:[#allocation2 + $0x9a0] sm:$0xff]  ;;  %v350_v15 = vld [vmem:[#allocation2 + $0x9a8] sm:$0xff] }
  0x9b   :  { %2239 = vst [vmem:[#allocation7 + $0x4b0] sm:$0xff] %v2862_v5  ;;  %v2865_v14 = vpack.c.bf16 %v348_v12, %v347_v11  ;;  %v351_v16 = vld [vmem:[#allocation2 + $0x9b0] sm:$0xff]  ;;  %v352_v17 = vld [vmem:[#allocation2 + $0x9b8] sm:$0xff]  ;;  %2240 = vst [vmem:[#allocation7 + $0x4b8] sm:$0xff] %v2863_v9  ;;  %v2866_v18 = vpack.c.bf16 %v350_v15, %v349_v13 }
  0x9c   :  { %2241 = vst [vmem:[#allocation7 + $0x4c0] sm:$0xff] %v2864_v10  ;;  %v2867_v19 = vpack.c.bf16 %v352_v17, %v351_v16  ;;  %v353_v20 = vld [vmem:[#allocation2 + $0x9c0] sm:$0xff]  ;;  %v354_v21 = vld [vmem:[#allocation2 + $0x9c8] sm:$0xff]  ;;  %v355_v22 = vld [vmem:[#allocation2 + $0x9d0] sm:$0xff] }
  0x9d   :  { %2242 = vst [vmem:[#allocation7 + $0x4c8] sm:$0xff] %v2865_v14  ;;  %v2868_v23 = vpack.c.bf16 %v354_v21, %v353_v20  ;;  %v356_v24 = vld [vmem:[#allocation2 + $0x9d8] sm:$0xff]  ;;  %v357_v25 = vld [vmem:[#allocation2 + $0x9e0] sm:$0xff]  ;;  %v358_v26 = vld [vmem:[#allocation2 + $0x9e8] sm:$0xff] }
  0x9e   :  { %2243 = vst [vmem:[#allocation7 + $0x4d0] sm:$0xff] %v2866_v18  ;;  %2244 = vst [vmem:[#allocation7 + $0x4d8] sm:$0xff] %v2867_v19  ;;  %v2869_v27 = vpack.c.bf16 %v356_v24, %v355_v22  ;;  %v2870_v28 = vpack.c.bf16 %v358_v26, %v357_v25  ;;  %v359_v29 = vld [vmem:[#allocation2 + $0x9f0] sm:$0xff]  ;;  %v360_v30 = vld [vmem:[#allocation2 + $0x9f8] sm:$0xff] }
  0x9f   :  { %v361_v31 = vld [vmem:[#allocation2 + $0xa00] sm:$0xff]  ;;  %2245 = vst [vmem:[#allocation7 + $0x4e0] sm:$0xff] %v2868_v23  ;;  %v2871_v32 = vpack.c.bf16 %v360_v30, %v359_v29  ;;  %v362_v33 = vld [vmem:[#allocation2 + $0xa08] sm:$0xff]  ;;  %v363_v34 = vld [vmem:[#allocation2 + $0xa10] sm:$0xff] }
  0xa0   :  { %v364_v35 = vld [vmem:[#allocation2 + $0xa18] sm:$0xff]  ;;  %2246 = vst [vmem:[#allocation7 + $0x4e8] sm:$0xff] %v2869_v27  ;;  %2247 = vst [vmem:[#allocation7 + $0x4f0] sm:$0xff] %v2870_v28  ;;  %v2872_v36 = vpack.c.bf16 %v362_v33, %v361_v31  ;;  %v365_v38 = vld [vmem:[#allocation2 + $0xa20] sm:$0xff] }
  0xa1   :  { %v2873_v37 = vpack.c.bf16 %v364_v35, %v363_v34  ;;  %v366_v39 = vld [vmem:[#allocation2 + $0xa28] sm:$0xff]  ;;  %v367_v40 = vld [vmem:[#allocation2 + $0xa30] sm:$0xff]  ;;  %2248 = vst [vmem:[#allocation7 + $0x4f8] sm:$0xff] %v2871_v32  ;;  %v368_v42 = vld [vmem:[#allocation2 + $0xa38] sm:$0xff] }
  0xa2   :  { %v2874_v41 = vpack.c.bf16 %v366_v39, %v365_v38  ;;  %v369_v43 = vld [vmem:[#allocation2 + $0xa40] sm:$0xff]  ;;  %v370_v44 = vld [vmem:[#allocation2 + $0xa48] sm:$0xff]  ;;  %2249 = vst [vmem:[#allocation7 + $0x500] sm:$0xff] %v2872_v36  ;;  %v2875_v45 = vpack.c.bf16 %v368_v42, %v367_v40  ;;  %v371_v47 = vld [vmem:[#allocation2 + $0xa50] sm:$0xff] }
  0xa3   :  { %2250 = vst [vmem:[#allocation7 + $0x508] sm:$0xff] %v2873_v37  ;;  %v2876_v46 = vpack.c.bf16 %v370_v44, %v369_v43  ;;  %v372_v48 = vld [vmem:[#allocation2 + $0xa58] sm:$0xff]  ;;  %v373_v49 = vld [vmem:[#allocation2 + $0xa60] sm:$0xff]  ;;  %v374_v51 = vld [vmem:[#allocation2 + $0xa68] sm:$0xff] }
  0xa4   :  { %2251 = vst [vmem:[#allocation7 + $0x510] sm:$0xff] %v2874_v41  ;;  %v2877_v50 = vpack.c.bf16 %v372_v48, %v371_v47  ;;  %v375_v52 = vld [vmem:[#allocation2 + $0xa70] sm:$0xff]  ;;  %v376_v53 = vld [vmem:[#allocation2 + $0xa78] sm:$0xff]  ;;  %2252 = vst [vmem:[#allocation7 + $0x518] sm:$0xff] %v2875_v45  ;;  %v2878_v54 = vpack.c.bf16 %v374_v51, %v373_v49 }
  0xa5   :  { %2253 = vst [vmem:[#allocation7 + $0x520] sm:$0xff] %v2876_v46  ;;  %v2879_v55 = vpack.c.bf16 %v376_v53, %v375_v52  ;;  %v377_v56 = vld [vmem:[#allocation2 + $0xa80] sm:$0xff]  ;;  %v378_v57 = vld [vmem:[#allocation2 + $0xa88] sm:$0xff]  ;;  %v379_v58 = vld [vmem:[#allocation2 + $0xa90] sm:$0xff] }
  0xa6   :  { %2254 = vst [vmem:[#allocation7 + $0x528] sm:$0xff] %v2877_v50  ;;  %v2880_v59 = vpack.c.bf16 %v378_v57, %v377_v56  ;;  %v380_v60 = vld [vmem:[#allocation2 + $0xa98] sm:$0xff]  ;;  %v381_v61 = vld [vmem:[#allocation2 + $0xaa0] sm:$0xff]  ;;  %v382_v62 = vld [vmem:[#allocation2 + $0xaa8] sm:$0xff] }
  0xa7   :  { %2255 = vst [vmem:[#allocation7 + $0x530] sm:$0xff] %v2878_v54  ;;  %2256 = vst [vmem:[#allocation7 + $0x538] sm:$0xff] %v2879_v55  ;;  %v2881_v63 = vpack.c.bf16 %v380_v60, %v379_v58  ;;  %v2882_v0 = vpack.c.bf16 %v382_v62, %v381_v61  ;;  %v383_v1 = vld [vmem:[#allocation2 + $0xab0] sm:$0xff]  ;;  %v384_v2 = vld [vmem:[#allocation2 + $0xab8] sm:$0xff] }
  0xa8   :  { %v385_v3 = vld [vmem:[#allocation2 + $0xac0] sm:$0xff]  ;;  %2257 = vst [vmem:[#allocation7 + $0x540] sm:$0xff] %v2880_v59  ;;  %v2883_v4 = vpack.c.bf16 %v384_v2, %v383_v1  ;;  %v386_v5 = vld [vmem:[#allocation2 + $0xac8] sm:$0xff]  ;;  %v387_v6 = vld [vmem:[#allocation2 + $0xad0] sm:$0xff] }
  0xa9   :  { %v388_v7 = vld [vmem:[#allocation2 + $0xad8] sm:$0xff]  ;;  %2258 = vst [vmem:[#allocation7 + $0x548] sm:$0xff] %v2881_v63  ;;  %2259 = vst [vmem:[#allocation7 + $0x550] sm:$0xff] %v2882_v0  ;;  %v2884_v8 = vpack.c.bf16 %v386_v5, %v385_v3  ;;  %v389_v10 = vld [vmem:[#allocation2 + $0xae0] sm:$0xff] }
  0xaa   :  { %v2885_v9 = vpack.c.bf16 %v388_v7, %v387_v6  ;;  %v390_v11 = vld [vmem:[#allocation2 + $0xae8] sm:$0xff]  ;;  %v391_v12 = vld [vmem:[#allocation2 + $0xaf0] sm:$0xff]  ;;  %2260 = vst [vmem:[#allocation7 + $0x558] sm:$0xff] %v2883_v4  ;;  %v392_v14 = vld [vmem:[#allocation2 + $0xaf8] sm:$0xff] }
  0xab   :  { %v2886_v13 = vpack.c.bf16 %v390_v11, %v389_v10  ;;  %v393_v15 = vld [vmem:[#allocation2 + $0xb00] sm:$0xff]  ;;  %v394_v16 = vld [vmem:[#allocation2 + $0xb08] sm:$0xff]  ;;  %2261 = vst [vmem:[#allocation7 + $0x560] sm:$0xff] %v2884_v8  ;;  %v2887_v17 = vpack.c.bf16 %v392_v14, %v391_v12  ;;  %v395_v19 = vld [vmem:[#allocation2 + $0xb10] sm:$0xff] }
  0xac   :  { %2262 = vst [vmem:[#allocation7 + $0x568] sm:$0xff] %v2885_v9  ;;  %v2888_v18 = vpack.c.bf16 %v394_v16, %v393_v15  ;;  %v396_v20 = vld [vmem:[#allocation2 + $0xb18] sm:$0xff]  ;;  %v397_v21 = vld [vmem:[#allocation2 + $0xb20] sm:$0xff]  ;;  %v398_v23 = vld [vmem:[#allocation2 + $0xb28] sm:$0xff] }
  0xad   :  { %2263 = vst [vmem:[#allocation7 + $0x570] sm:$0xff] %v2886_v13  ;;  %v2889_v22 = vpack.c.bf16 %v396_v20, %v395_v19  ;;  %v399_v24 = vld [vmem:[#allocation2 + $0xb30] sm:$0xff]  ;;  %v400_v25 = vld [vmem:[#allocation2 + $0xb38] sm:$0xff]  ;;  %2264 = vst [vmem:[#allocation7 + $0x578] sm:$0xff] %v2887_v17  ;;  %v2890_v26 = vpack.c.bf16 %v398_v23, %v397_v21 }
  0xae   :  { %2265 = vst [vmem:[#allocation7 + $0x580] sm:$0xff] %v2888_v18  ;;  %v2891_v27 = vpack.c.bf16 %v400_v25, %v399_v24  ;;  %v401_v28 = vld [vmem:[#allocation2 + $0xb40] sm:$0xff]  ;;  %v402_v29 = vld [vmem:[#allocation2 + $0xb48] sm:$0xff]  ;;  %v403_v30 = vld [vmem:[#allocation2 + $0xb50] sm:$0xff] }
  0xaf   :  { %2266 = vst [vmem:[#allocation7 + $0x588] sm:$0xff] %v2889_v22  ;;  %v2892_v31 = vpack.c.bf16 %v402_v29, %v401_v28  ;;  %v404_v32 = vld [vmem:[#allocation2 + $0xb58] sm:$0xff]  ;;  %v405_v33 = vld [vmem:[#allocation2 + $0xb60] sm:$0xff]  ;;  %v406_v34 = vld [vmem:[#allocation2 + $0xb68] sm:$0xff] }
  0xb0   :  { %2267 = vst [vmem:[#allocation7 + $0x590] sm:$0xff] %v2890_v26  ;;  %2268 = vst [vmem:[#allocation7 + $0x598] sm:$0xff] %v2891_v27  ;;  %v2893_v35 = vpack.c.bf16 %v404_v32, %v403_v30  ;;  %v2894_v36 = vpack.c.bf16 %v406_v34, %v405_v33  ;;  %v407_v37 = vld [vmem:[#allocation2 + $0xb70] sm:$0xff]  ;;  %v408_v38 = vld [vmem:[#allocation2 + $0xb78] sm:$0xff] }
  0xb1   :  { %v409_v39 = vld [vmem:[#allocation2 + $0xb80] sm:$0xff]  ;;  %2269 = vst [vmem:[#allocation7 + $0x5a0] sm:$0xff] %v2892_v31  ;;  %v2895_v40 = vpack.c.bf16 %v408_v38, %v407_v37  ;;  %v410_v41 = vld [vmem:[#allocation2 + $0xb88] sm:$0xff]  ;;  %v411_v42 = vld [vmem:[#allocation2 + $0xb90] sm:$0xff] }
  0xb2   :  { %v412_v43 = vld [vmem:[#allocation2 + $0xb98] sm:$0xff]  ;;  %2270 = vst [vmem:[#allocation7 + $0x5a8] sm:$0xff] %v2893_v35  ;;  %2271 = vst [vmem:[#allocation7 + $0x5b0] sm:$0xff] %v2894_v36  ;;  %v2896_v44 = vpack.c.bf16 %v410_v41, %v409_v39  ;;  %v413_v46 = vld [vmem:[#allocation2 + $0xba0] sm:$0xff] }
  0xb3   :  { %v2897_v45 = vpack.c.bf16 %v412_v43, %v411_v42  ;;  %v414_v47 = vld [vmem:[#allocation2 + $0xba8] sm:$0xff]  ;;  %v415_v48 = vld [vmem:[#allocation2 + $0xbb0] sm:$0xff]  ;;  %2272 = vst [vmem:[#allocation7 + $0x5b8] sm:$0xff] %v2895_v40  ;;  %v416_v50 = vld [vmem:[#allocation2 + $0xbb8] sm:$0xff] }
  0xb4   :  { %v2898_v49 = vpack.c.bf16 %v414_v47, %v413_v46  ;;  %v417_v51 = vld [vmem:[#allocation2 + $0xbc0] sm:$0xff]  ;;  %v418_v52 = vld [vmem:[#allocation2 + $0xbc8] sm:$0xff]  ;;  %2273 = vst [vmem:[#allocation7 + $0x5c0] sm:$0xff] %v2896_v44  ;;  %v2899_v53 = vpack.c.bf16 %v416_v50, %v415_v48  ;;  %v419_v55 = vld [vmem:[#allocation2 + $0xbd0] sm:$0xff] }
  0xb5   :  { %2274 = vst [vmem:[#allocation7 + $0x5c8] sm:$0xff] %v2897_v45  ;;  %v2900_v54 = vpack.c.bf16 %v418_v52, %v417_v51  ;;  %v420_v56 = vld [vmem:[#allocation2 + $0xbd8] sm:$0xff]  ;;  %v421_v57 = vld [vmem:[#allocation2 + $0xbe0] sm:$0xff]  ;;  %v422_v59 = vld [vmem:[#allocation2 + $0xbe8] sm:$0xff] }
  0xb6   :  { %2275 = vst [vmem:[#allocation7 + $0x5d0] sm:$0xff] %v2898_v49  ;;  %v2901_v58 = vpack.c.bf16 %v420_v56, %v419_v55  ;;  %v423_v60 = vld [vmem:[#allocation2 + $0xbf0] sm:$0xff]  ;;  %v424_v61 = vld [vmem:[#allocation2 + $0xbf8] sm:$0xff]  ;;  %2276 = vst [vmem:[#allocation7 + $0x5d8] sm:$0xff] %v2899_v53  ;;  %v2902_v62 = vpack.c.bf16 %v422_v59, %v421_v57 }
  0xb7   :  { %2277 = vst [vmem:[#allocation7 + $0x5e0] sm:$0xff] %v2900_v54  ;;  %v2903_v63 = vpack.c.bf16 %v424_v61, %v423_v60  ;;  %v425_v0 = vld [vmem:[#allocation2 + $0xc00] sm:$0xff]  ;;  %v426_v1 = vld [vmem:[#allocation2 + $0xc08] sm:$0xff]  ;;  %v427_v2 = vld [vmem:[#allocation2 + $0xc10] sm:$0xff] }
  0xb8   :  { %2278 = vst [vmem:[#allocation7 + $0x5e8] sm:$0xff] %v2901_v58  ;;  %v2904_v3 = vpack.c.bf16 %v426_v1, %v425_v0  ;;  %v428_v4 = vld [vmem:[#allocation2 + $0xc18] sm:$0xff]  ;;  %v429_v5 = vld [vmem:[#allocation2 + $0xc20] sm:$0xff]  ;;  %v430_v6 = vld [vmem:[#allocation2 + $0xc28] sm:$0xff] }
  0xb9   :  { %2279 = vst [vmem:[#allocation7 + $0x5f0] sm:$0xff] %v2902_v62  ;;  %2280 = vst [vmem:[#allocation7 + $0x5f8] sm:$0xff] %v2903_v63  ;;  %v2905_v7 = vpack.c.bf16 %v428_v4, %v427_v2  ;;  %v2906_v8 = vpack.c.bf16 %v430_v6, %v429_v5  ;;  %v431_v9 = vld [vmem:[#allocation2 + $0xc30] sm:$0xff]  ;;  %v432_v10 = vld [vmem:[#allocation2 + $0xc38] sm:$0xff] }
  0xba   :  { %v433_v11 = vld [vmem:[#allocation2 + $0xc40] sm:$0xff]  ;;  %2281 = vst [vmem:[#allocation7 + $0x600] sm:$0xff] %v2904_v3  ;;  %v2907_v12 = vpack.c.bf16 %v432_v10, %v431_v9  ;;  %v434_v13 = vld [vmem:[#allocation2 + $0xc48] sm:$0xff]  ;;  %v435_v14 = vld [vmem:[#allocation2 + $0xc50] sm:$0xff] }
  0xbb   :  { %v436_v15 = vld [vmem:[#allocation2 + $0xc58] sm:$0xff]  ;;  %2282 = vst [vmem:[#allocation7 + $0x608] sm:$0xff] %v2905_v7  ;;  %2283 = vst [vmem:[#allocation7 + $0x610] sm:$0xff] %v2906_v8  ;;  %v2908_v16 = vpack.c.bf16 %v434_v13, %v433_v11  ;;  %v437_v18 = vld [vmem:[#allocation2 + $0xc60] sm:$0xff] }
  0xbc   :  { %v2909_v17 = vpack.c.bf16 %v436_v15, %v435_v14  ;;  %v438_v19 = vld [vmem:[#allocation2 + $0xc68] sm:$0xff]  ;;  %v439_v20 = vld [vmem:[#allocation2 + $0xc70] sm:$0xff]  ;;  %2284 = vst [vmem:[#allocation7 + $0x618] sm:$0xff] %v2907_v12  ;;  %v440_v22 = vld [vmem:[#allocation2 + $0xc78] sm:$0xff] }
  0xbd   :  { %v2910_v21 = vpack.c.bf16 %v438_v19, %v437_v18  ;;  %v441_v23 = vld [vmem:[#allocation2 + $0xc80] sm:$0xff]  ;;  %v442_v24 = vld [vmem:[#allocation2 + $0xc88] sm:$0xff]  ;;  %2285 = vst [vmem:[#allocation7 + $0x620] sm:$0xff] %v2908_v16  ;;  %v2911_v25 = vpack.c.bf16 %v440_v22, %v439_v20  ;;  %v443_v27 = vld [vmem:[#allocation2 + $0xc90] sm:$0xff] }
  0xbe   :  { %2286 = vst [vmem:[#allocation7 + $0x628] sm:$0xff] %v2909_v17  ;;  %v2912_v26 = vpack.c.bf16 %v442_v24, %v441_v23  ;;  %v444_v28 = vld [vmem:[#allocation2 + $0xc98] sm:$0xff]  ;;  %v445_v29 = vld [vmem:[#allocation2 + $0xca0] sm:$0xff]  ;;  %v446_v31 = vld [vmem:[#allocation2 + $0xca8] sm:$0xff] }
  0xbf   :  { %2287 = vst [vmem:[#allocation7 + $0x630] sm:$0xff] %v2910_v21  ;;  %v2913_v30 = vpack.c.bf16 %v444_v28, %v443_v27  ;;  %v447_v32 = vld [vmem:[#allocation2 + $0xcb0] sm:$0xff]  ;;  %v448_v33 = vld [vmem:[#allocation2 + $0xcb8] sm:$0xff]  ;;  %2288 = vst [vmem:[#allocation7 + $0x638] sm:$0xff] %v2911_v25  ;;  %v2914_v34 = vpack.c.bf16 %v446_v31, %v445_v29 }
  0xc0   :  { %2289 = vst [vmem:[#allocation7 + $0x640] sm:$0xff] %v2912_v26  ;;  %v2915_v35 = vpack.c.bf16 %v448_v33, %v447_v32  ;;  %v449_v36 = vld [vmem:[#allocation2 + $0xcc0] sm:$0xff]  ;;  %v450_v37 = vld [vmem:[#allocation2 + $0xcc8] sm:$0xff]  ;;  %v451_v38 = vld [vmem:[#allocation2 + $0xcd0] sm:$0xff] }
  0xc1   :  { %2290 = vst [vmem:[#allocation7 + $0x648] sm:$0xff] %v2913_v30  ;;  %v2916_v39 = vpack.c.bf16 %v450_v37, %v449_v36  ;;  %v452_v40 = vld [vmem:[#allocation2 + $0xcd8] sm:$0xff]  ;;  %v453_v41 = vld [vmem:[#allocation2 + $0xce0] sm:$0xff]  ;;  %v454_v42 = vld [vmem:[#allocation2 + $0xce8] sm:$0xff] }
  0xc2   :  { %2291 = vst [vmem:[#allocation7 + $0x650] sm:$0xff] %v2914_v34  ;;  %2292 = vst [vmem:[#allocation7 + $0x658] sm:$0xff] %v2915_v35  ;;  %v2917_v43 = vpack.c.bf16 %v452_v40, %v451_v38  ;;  %v2918_v44 = vpack.c.bf16 %v454_v42, %v453_v41  ;;  %v455_v45 = vld [vmem:[#allocation2 + $0xcf0] sm:$0xff]  ;;  %v456_v46 = vld [vmem:[#allocation2 + $0xcf8] sm:$0xff] }
  0xc3   :  { %v457_v47 = vld [vmem:[#allocation2 + $0xd00] sm:$0xff]  ;;  %2293 = vst [vmem:[#allocation7 + $0x660] sm:$0xff] %v2916_v39  ;;  %v2919_v48 = vpack.c.bf16 %v456_v46, %v455_v45  ;;  %v458_v49 = vld [vmem:[#allocation2 + $0xd08] sm:$0xff]  ;;  %v459_v50 = vld [vmem:[#allocation2 + $0xd10] sm:$0xff] }
  0xc4   :  { %v460_v51 = vld [vmem:[#allocation2 + $0xd18] sm:$0xff]  ;;  %2294 = vst [vmem:[#allocation7 + $0x668] sm:$0xff] %v2917_v43  ;;  %2295 = vst [vmem:[#allocation7 + $0x670] sm:$0xff] %v2918_v44  ;;  %v2920_v52 = vpack.c.bf16 %v458_v49, %v457_v47  ;;  %v461_v54 = vld [vmem:[#allocation2 + $0xd20] sm:$0xff] }
  0xc5   :  { %v2921_v53 = vpack.c.bf16 %v460_v51, %v459_v50  ;;  %v462_v55 = vld [vmem:[#allocation2 + $0xd28] sm:$0xff]  ;;  %v463_v56 = vld [vmem:[#allocation2 + $0xd30] sm:$0xff]  ;;  %2296 = vst [vmem:[#allocation7 + $0x678] sm:$0xff] %v2919_v48  ;;  %v464_v58 = vld [vmem:[#allocation2 + $0xd38] sm:$0xff] }
  0xc6   :  { %v2922_v57 = vpack.c.bf16 %v462_v55, %v461_v54  ;;  %v465_v59 = vld [vmem:[#allocation2 + $0xd40] sm:$0xff]  ;;  %v466_v60 = vld [vmem:[#allocation2 + $0xd48] sm:$0xff]  ;;  %2297 = vst [vmem:[#allocation7 + $0x680] sm:$0xff] %v2920_v52  ;;  %v2923_v61 = vpack.c.bf16 %v464_v58, %v463_v56  ;;  %v467_v63 = vld [vmem:[#allocation2 + $0xd50] sm:$0xff] }
  0xc7   :  { %2298 = vst [vmem:[#allocation7 + $0x688] sm:$0xff] %v2921_v53  ;;  %v2924_v62 = vpack.c.bf16 %v466_v60, %v465_v59  ;;  %v468_v0 = vld [vmem:[#allocation2 + $0xd58] sm:$0xff]  ;;  %v469_v1 = vld [vmem:[#allocation2 + $0xd60] sm:$0xff]  ;;  %v470_v3 = vld [vmem:[#allocation2 + $0xd68] sm:$0xff] }
  0xc8   :  { %2299 = vst [vmem:[#allocation7 + $0x690] sm:$0xff] %v2922_v57  ;;  %v2925_v2 = vpack.c.bf16 %v468_v0, %v467_v63  ;;  %v471_v4 = vld [vmem:[#allocation2 + $0xd70] sm:$0xff]  ;;  %v472_v5 = vld [vmem:[#allocation2 + $0xd78] sm:$0xff]  ;;  %2300 = vst [vmem:[#allocation7 + $0x698] sm:$0xff] %v2923_v61  ;;  %v2926_v6 = vpack.c.bf16 %v470_v3, %v469_v1 }
  0xc9   :  { %2301 = vst [vmem:[#allocation7 + $0x6a0] sm:$0xff] %v2924_v62  ;;  %v2927_v7 = vpack.c.bf16 %v472_v5, %v471_v4  ;;  %v473_v8 = vld [vmem:[#allocation2 + $0xd80] sm:$0xff]  ;;  %v474_v9 = vld [vmem:[#allocation2 + $0xd88] sm:$0xff]  ;;  %v475_v10 = vld [vmem:[#allocation2 + $0xd90] sm:$0xff]  ;;  %v2351_v5 = vlaneseq }
  0xca   :  { %2302 = vst [vmem:[#allocation7 + $0x6a8] sm:$0xff] %v2925_v2  ;;  %v2928_v11 = vpack.c.bf16 %v474_v9, %v473_v8  ;;  %v476_v12 = vld [vmem:[#allocation2 + $0xd98] sm:$0xff]  ;;  %v477_v13 = vld [vmem:[#allocation2 + $0xda0] sm:$0xff]  ;;  %v478_v14 = vld [vmem:[#allocation2 + $0xda8] sm:$0xff] }
  0xcb   :  { %2303 = vst [vmem:[#allocation7 + $0x6b0] sm:$0xff] %v2926_v6  ;;  %2304 = vst [vmem:[#allocation7 + $0x6b8] sm:$0xff] %v2927_v7  ;;  %v2929_v15 = vpack.c.bf16 %v476_v12, %v475_v10  ;;  %v2930_v16 = vpack.c.bf16 %v478_v14, %v477_v13  ;;  %v479_v17 = vld [vmem:[#allocation2 + $0xdb0] sm:$0xff]  ;;  %v480_v18 = vld [vmem:[#allocation2 + $0xdb8] sm:$0xff] }
  0xcc   :  { %v481_v19 = vld [vmem:[#allocation2 + $0xdc0] sm:$0xff]  ;;  %2305 = vst [vmem:[#allocation7 + $0x6c0] sm:$0xff] %v2928_v11  ;;  %v2931_v20 = vpack.c.bf16 %v480_v18, %v479_v17  ;;  %v482_v21 = vld [vmem:[#allocation2 + $0xdc8] sm:$0xff]  ;;  %v483_v22 = vld [vmem:[#allocation2 + $0xdd0] sm:$0xff] }
  0xcd   :  { %v484_v23 = vld [vmem:[#allocation2 + $0xdd8] sm:$0xff]  ;;  %2306 = vst [vmem:[#allocation7 + $0x6c8] sm:$0xff] %v2929_v15  ;;  %2307 = vst [vmem:[#allocation7 + $0x6d0] sm:$0xff] %v2930_v16  ;;  %v2932_v24 = vpack.c.bf16 %v482_v21, %v481_v19  ;;  %v485_v26 = vld [vmem:[#allocation2 + $0xde0] sm:$0xff] }
  0xce   :  { %v2933_v25 = vpack.c.bf16 %v484_v23, %v483_v22  ;;  %v486_v27 = vld [vmem:[#allocation2 + $0xde8] sm:$0xff]  ;;  %v487_v28 = vld [vmem:[#allocation2 + $0xdf0] sm:$0xff]  ;;  %2308 = vst [vmem:[#allocation7 + $0x6d8] sm:$0xff] %v2931_v20  ;;  %v488_v30 = vld [vmem:[#allocation2 + $0xdf8] sm:$0xff] }
  0xcf   :  { %v2934_v29 = vpack.c.bf16 %v486_v27, %v485_v26  ;;  %v489_v31 = vld [vmem:[#allocation2 + $0xe00] sm:$0xff]  ;;  %v490_v32 = vld [vmem:[#allocation2 + $0xe08] sm:$0xff]  ;;  %2309 = vst [vmem:[#allocation7 + $0x6e0] sm:$0xff] %v2932_v24  ;;  %v2935_v33 = vpack.c.bf16 %v488_v30, %v487_v28  ;;  %v491_v35 = vld [vmem:[#allocation2 + $0xe10] sm:$0xff]  ;;  %v3126_v24 = vshrl.u32 %v2351_v5, 7 }
  0xd0   :  { %2310 = vst [vmem:[#allocation7 + $0x6e8] sm:$0xff] %v2933_v25  ;;  %v2936_v34 = vpack.c.bf16 %v490_v32, %v489_v31  ;;  %v492_v36 = vld [vmem:[#allocation2 + $0xe18] sm:$0xff]  ;;  %v493_v37 = vld [vmem:[#allocation2 + $0xe20] sm:$0xff]  ;;  %v494_v39 = vld [vmem:[#allocation2 + $0xe28] sm:$0xff]  ;;  %v3077_v30 = vmov 1966171168  }
  0xd1   :  { %2311 = vst [vmem:[#allocation7 + $0x6f0] sm:$0xff] %v2934_v29  ;;  %v2937_v38 = vpack.c.bf16 %v492_v36, %v491_v35  ;;  %v495_v40 = vld [vmem:[#allocation2 + $0xe30] sm:$0xff]  ;;  %v496_v41 = vld [vmem:[#allocation2 + $0xe38] sm:$0xff]  ;;  %2312 = vst [vmem:[#allocation7 + $0x6f8] sm:$0xff] %v2935_v33  ;;  %v2938_v42 = vpack.c.bf16 %v494_v39, %v493_v37  ;;  %v2382_v31 = vunpack.c.l.s4 %v3077_v30 }
  0xd2   :  { %2313 = vst [vmem:[#allocation7 + $0x700] sm:$0xff] %v2936_v34  ;;  %v2939_v43 = vpack.c.bf16 %v496_v41, %v495_v40  ;;  %v497_v44 = vld [vmem:[#allocation2 + $0xe40] sm:$0xff]  ;;  %v498_v45 = vld [vmem:[#allocation2 + $0xe48] sm:$0xff]  ;;  %v499_v46 = vld [vmem:[#allocation2 + $0xe50] sm:$0xff] }
  0xd3   :  { %2314 = vst [vmem:[#allocation7 + $0x708] sm:$0xff] %v2937_v38  ;;  %v2940_v47 = vpack.c.bf16 %v498_v45, %v497_v44  ;;  %v500_v48 = vld [vmem:[#allocation2 + $0xe58] sm:$0xff]  ;;  %v501_v49 = vld [vmem:[#allocation2 + $0xe60] sm:$0xff]  ;;  %v502_v50 = vld [vmem:[#allocation2 + $0xe68] sm:$0xff]  ;;  %v2353_v45 = vsub.s32 0, %v3126_v24 }
  0xd4   :  { %2315 = vst [vmem:[#allocation7 + $0x710] sm:$0xff] %v2938_v42  ;;  %2316 = vst [vmem:[#allocation7 + $0x718] sm:$0xff] %v2939_v43  ;;  %v2941_v51 = vpack.c.bf16 %v500_v48, %v499_v46  ;;  %v2942_v52 = vpack.c.bf16 %v502_v50, %v501_v49  ;;  %v503_v53 = vld [vmem:[#allocation2 + $0xe70] sm:$0xff]  ;;  %v504_v54 = vld [vmem:[#allocation2 + $0xe78] sm:$0xff]  ;;  %v2357_v46 = vsub.s32 1, %v3126_v24 }
  0xd5   :  { %v505_v55 = vld [vmem:[#allocation2 + $0xe80] sm:$0xff]  ;;  %2317 = vst [vmem:[#allocation7 + $0x720] sm:$0xff] %v2940_v47  ;;  %v2943_v56 = vpack.c.bf16 %v504_v54, %v503_v53  ;;  %v506_v57 = vld [vmem:[#allocation2 + $0xe88] sm:$0xff]  ;;  %v507_v58 = vld [vmem:[#allocation2 + $0xe90] sm:$0xff]  ;;  %v2383_v53 = vunpack.c.0.s8 %v2382_v31 }
  0xd6   :  { %v508_v59 = vld [vmem:[#allocation2 + $0xe98] sm:$0xff]  ;;  %2318 = vst [vmem:[#allocation7 + $0x728] sm:$0xff] %v2941_v51  ;;  %2319 = vst [vmem:[#allocation7 + $0x730] sm:$0xff] %v2942_v52  ;;  %v2944_v60 = vpack.c.bf16 %v506_v57, %v505_v55  ;;  %v509_v62 = vld [vmem:[#allocation2 + $0xea0] sm:$0xff]  ;;  %v2361_v52 = vsub.s32 2, %v3126_v24 }
  0xd7   :  { %v2945_v61 = vpack.c.bf16 %v508_v59, %v507_v58  ;;  %v510_v63 = vld [vmem:[#allocation2 + $0xea8] sm:$0xff]  ;;  %v511_v0 = vld [vmem:[#allocation2 + $0xeb0] sm:$0xff]  ;;  %2320 = vst [vmem:[#allocation7 + $0x738] sm:$0xff] %v2943_v56  ;;  %v512_v2 = vld [vmem:[#allocation2 + $0xeb8] sm:$0xff]  ;;  %v2365_v58 = vsub.s32 3, %v3126_v24 }
  0xd8   :  { %v2946_v1 = vpack.c.bf16 %v510_v63, %v509_v62  ;;  %v513_v3 = vld [vmem:[#allocation2 + $0xec0] sm:$0xff]  ;;  %v514_v4 = vld [vmem:[#allocation2 + $0xec8] sm:$0xff]  ;;  %2321 = vst [vmem:[#allocation7 + $0x740] sm:$0xff] %v2944_v60  ;;  %v2947_v6 = vpack.c.bf16 %v512_v2, %v511_v0  ;;  %v515_v8 = vld [vmem:[#allocation2 + $0xed0] sm:$0xff] }
  0xd9   :  { %2322 = vst [vmem:[#allocation7 + $0x748] sm:$0xff] %v2945_v61  ;;  %v2948_v7 = vpack.c.bf16 %v514_v4, %v513_v3  ;;  %v516_v9 = vld [vmem:[#allocation2 + $0xed8] sm:$0xff]  ;;  %v517_v10 = vld [vmem:[#allocation2 + $0xee0] sm:$0xff]  ;;  %v518_v12 = vld [vmem:[#allocation2 + $0xee8] sm:$0xff] }
  0xda   :  { %2323 = vst [vmem:[#allocation7 + $0x750] sm:$0xff] %v2946_v1  ;;  %v2949_v11 = vpack.c.bf16 %v516_v9, %v515_v8  ;;  %v519_v13 = vld [vmem:[#allocation2 + $0xef0] sm:$0xff]  ;;  %v520_v14 = vld [vmem:[#allocation2 + $0xef8] sm:$0xff]  ;;  %2324 = vst [vmem:[#allocation7 + $0x758] sm:$0xff] %v2947_v6  ;;  %v2950_v15 = vpack.c.bf16 %v518_v12, %v517_v10  ;;  %v2386_v9 = vsub.s32 %v2383_v53, %v3126_v24 }
  0xdb   :  { %2325 = vst [vmem:[#allocation7 + $0x760] sm:$0xff] %v2948_v7  ;;  %v2951_v16 = vpack.c.bf16 %v520_v14, %v519_v13  ;;  %v521_v17 = vld [vmem:[#allocation2 + $0xf00] sm:$0xff]  ;;  %v522_v18 = vld [vmem:[#allocation2 + $0xf08] sm:$0xff]  ;;  %v523_v19 = vld [vmem:[#allocation2 + $0xf10] sm:$0xff] }
  0xdc   :  { %2326 = vst [vmem:[#allocation7 + $0x768] sm:$0xff] %v2949_v11  ;;  %v2952_v20 = vpack.c.bf16 %v522_v18, %v521_v17  ;;  %v524_v21 = vld [vmem:[#allocation2 + $0xf18] sm:$0xff]  ;;  %v525_v22 = vld [vmem:[#allocation2 + $0xf20] sm:$0xff]  ;;  %v526_v23 = vld [vmem:[#allocation2 + $0xf28] sm:$0xff] }
  0xdd   :  { %2327 = vst [vmem:[#allocation7 + $0x770] sm:$0xff] %v2950_v15  ;;  %2328 = vst [vmem:[#allocation7 + $0x778] sm:$0xff] %v2951_v16  ;;  %v2953_v25 = vpack.c.bf16 %v524_v21, %v523_v19  ;;  %v2954_v26 = vpack.c.bf16 %v526_v23, %v525_v22  ;;  %v527_v27 = vld [vmem:[#allocation2 + $0xf30] sm:$0xff]  ;;  %v528_v28 = vld [vmem:[#allocation2 + $0xf38] sm:$0xff] }
  0xde   :  { %v529_v29 = vld [vmem:[#allocation2 + $0xf40] sm:$0xff]  ;;  %2329 = vst [vmem:[#allocation7 + $0x780] sm:$0xff] %v2952_v20  ;;  %v2955_v32 = vpack.c.bf16 %v528_v28, %v527_v27  ;;  %v530_v33 = vld [vmem:[#allocation2 + $0xf48] sm:$0xff]  ;;  %v531_v34 = vld [vmem:[#allocation2 + $0xf50] sm:$0xff] }
  0xdf   :  { %v532_v35 = vld [vmem:[#allocation2 + $0xf58] sm:$0xff]  ;;  %2330 = vst [vmem:[#allocation7 + $0x788] sm:$0xff] %v2953_v25  ;;  %2331 = vst [vmem:[#allocation7 + $0x790] sm:$0xff] %v2954_v26  ;;  %v2956_v36 = vpack.c.bf16 %v530_v33, %v529_v29  ;;  %v533_v38 = vld [vmem:[#allocation2 + $0xf60] sm:$0xff] }
  0xe0   :  { %v2957_v37 = vpack.c.bf16 %v532_v35, %v531_v34  ;;  %v534_v39 = vld [vmem:[#allocation2 + $0xf68] sm:$0xff]  ;;  %v535_v40 = vld [vmem:[#allocation2 + $0xf70] sm:$0xff]  ;;  %2332 = vst [vmem:[#allocation7 + $0x798] sm:$0xff] %v2955_v32  ;;  %v536_v42 = vld [vmem:[#allocation2 + $0xf78] sm:$0xff] }
  0xe1   :  { %v2958_v41 = vpack.c.bf16 %v534_v39, %v533_v38  ;;  %v537_v43 = vld [vmem:[#allocation2 + $0xf80] sm:$0xff]  ;;  %v538_v44 = vld [vmem:[#allocation2 + $0xf88] sm:$0xff]  ;;  %2333 = vst [vmem:[#allocation7 + $0x7a0] sm:$0xff] %v2956_v36  ;;  %v2959_v47 = vpack.c.bf16 %v536_v42, %v535_v40  ;;  %v539_v49 = vld [vmem:[#allocation2 + $0xf90] sm:$0xff] }
  0xe2   :  { %2334 = vst [vmem:[#allocation7 + $0x7a8] sm:$0xff] %v2957_v37  ;;  %v2960_v48 = vpack.c.bf16 %v538_v44, %v537_v43  ;;  %v540_v50 = vld [vmem:[#allocation2 + $0xf98] sm:$0xff]  ;;  %v541_v51 = vld [vmem:[#allocation2 + $0xfa0] sm:$0xff]  ;;  %v542_v55 = vld [vmem:[#allocation2 + $0xfa8] sm:$0xff] }
  0xe3   :  { %2335 = vst [vmem:[#allocation7 + $0x7b0] sm:$0xff] %v2958_v41  ;;  %v2961_v54 = vpack.c.bf16 %v540_v50, %v539_v49  ;;  %v543_v56 = vld [vmem:[#allocation2 + $0xfb0] sm:$0xff]  ;;  %v544_v57 = vld [vmem:[#allocation2 + $0xfb8] sm:$0xff]  ;;  %2336 = vst [vmem:[#allocation7 + $0x7b8] sm:$0xff] %v2959_v47  ;;  %v2962_v59 = vpack.c.bf16 %v542_v55, %v541_v51 }
  0xe4   :  { %2337 = vst [vmem:[#allocation7 + $0x7c0] sm:$0xff] %v2960_v48  ;;  %v2963_v60 = vpack.c.bf16 %v544_v57, %v543_v56  ;;  %v545_v61 = vld [vmem:[#allocation2 + $0xfc0] sm:$0xff]  ;;  %v546_v62 = vld [vmem:[#allocation2 + $0xfc8] sm:$0xff]  ;;  %v547_v63 = vld [vmem:[#allocation2 + $0xfd0] sm:$0xff] }
  0xe5   :  { %2338 = vst [vmem:[#allocation7 + $0x7c8] sm:$0xff] %v2961_v54  ;;  %v2964_v0 = vpack.c.bf16 %v546_v62, %v545_v61  ;;  %v548_v1 = vld [vmem:[#allocation2 + $0xfd8] sm:$0xff]  ;;  %v549_v2 = vld [vmem:[#allocation2 + $0xfe0] sm:$0xff]  ;;  %v550_v3 = vld [vmem:[#allocation2 + $0xfe8] sm:$0xff] }
  0xe6   :  { %2339 = vst [vmem:[#allocation7 + $0x7d0] sm:$0xff] %v2962_v59  ;;  %2340 = vst [vmem:[#allocation7 + $0x7d8] sm:$0xff] %v2963_v60  ;;  %v2965_v4 = vpack.c.bf16 %v548_v1, %v547_v63  ;;  %v2966_v5 = vpack.c.bf16 %v550_v3, %v549_v2  ;;  %v551_v6 = vld [vmem:[#allocation2 + $0xff0] sm:$0xff]  ;;  %v552_v7 = vld [vmem:[#allocation2 + $0xff8] sm:$0xff] }
  0xe7   :  { %v2349_v8 = vld [vmem:[#allocation5] sm:$0xf]  ;;  %2341 = vst [vmem:[#allocation7 + $0x7e0] sm:$0xff] %v2964_v0  ;;  %v2967_v10 = vpack.c.bf16 %v552_v7, %v551_v6  ;;  %vm3137_vm6 = vmand %vm2404_vm0, %vm2405_vm1 }
  0xe8   :  { %v2354_v11 = vrot.slane %v2349_v8, %v2353_v45  ;;  %v2358_v12 = vrot.slane %v2349_v8, %v2357_v46  ;;  %v2362_v13 = vrot.slane %v2349_v8, %v2361_v52  ;;  %2342 = vst [vmem:[#allocation7 + $0x7e8] sm:$0xff] %v2965_v4  ;;  %2343 = vst [vmem:[#allocation7 + $0x7f0] sm:$0xff] %v2966_v5 }
  0xe9   :  { %v2366_v15 = vrot.slane %v2349_v8, %v2365_v58  ;;  %vm3143_vm7 = vmand %vm2407_vm2, %vm2408_vm3  ;;  %2344 = vst [vmem:[#allocation7 + $0x7f8] sm:$0xff] %v2967_v10 }
  0xea   :  { %v2710_v17 = vpack.c.bf16 %v2358_v12, %v2354_v11  ;;  %vm2410_vm8 = vmor %vm3143_vm7, %vm3137_vm6 }
  0xeb   :  { %v2711_v18 = vpack.c.bf16 %v2366_v15, %v2362_v13  ;;  %vm3153_vm11 = vmand %vm2411_vm4, %vm2412_vm5 }
  0xec   :  { %3032 = shalt.err (!%p3029_p6)
}
  0xed   :  { %s3033_s14 = scalar_lea.hbm %s3197_s2, 32768 }
  0xee   :  { %p3034_p7 = scmp.ne.s32.totalorder %s3197_s2, %s3033_s14  ;;  %p3037_p8 = scmp.lt.u32.totalorder %s3033_s14, %s3197_s2 }
  0xf0   :  { %p3039_p9 = pnand %p3037_p8, %p3034_p7 }
  0xf2   :  { %3042 = shalt.err (!%p3039_p9)
}
  0xf3   :  { %s3079_s19 = smov 512   ;;  %s3080_s20 = smov 32   ;;  %v2387_v20 = vrot.slane %v2710_v17, %v2386_v9  ;;  %vm2414_vm12 = vmor %vm3153_vm11, %vm2410_vm8  ;;  %v2394_v21 = vrot.slane %v2711_v18, %v2386_v9  ;;  %v2419_v23 = vld [vmem:[#allocation8] sm:$0xf] }
  0xf4   :  { %2433 = dma.vmem_to_hbm [thread:$0]  %s3133_s10, 32768, %s3197_s2, [#allocation4], %s3079_s19, %s3079_s19, %s3080_s20   ;;  %vm2417_vm13 = vmand %vm2415_vm9, %vm2416_vm10 }
  0xf5   :  { %v2395_v22 = vcombine.low %v2387_v20, %v2394_v21  ;;  %s3081_s23 = smov [#allocation8]   ;;  %vm2418_vm14 = vmor %vm2417_vm13, %vm2414_vm12 }
  0xf6   :  { %s2440_s24 = sshll.u32 %s3081_s23, 4  ;;  %s2441_s24 = int_to_ptr.vmem [resolvable:$true] %s2440_s24 }
  0xf7   :  { %v2402_v24 = vrot.slane %v2395_v22, %v2386_v9  ;;  %s3043_s2 = scalar_lea.vmem %s2441_s24, 64  ;;  %p3048_p11 = scmp.lt.s32.totalorder %s2441_s24, %s2441_s24 }
  0xf8   :  { %p3044_p10 = scmp.ne.s32.totalorder %s2441_s24, %s3043_s2  ;;  %p3049_p12 = scmp.lt.s32.totalorder %s3043_s2, %s3043_s2 }
  0xf9   :  { %v2420_v25 = vsel %vm2418_vm14, %v2402_v24, %v2419_v23 }
  0xfa   :  { %2421 = vst [vmem:[#allocation8] sm:$0xf] %v2420_v25  ;;  %p3050_p13 = por %p3049_p12, %p3048_p11 }
  0xfc   :  { %p3051_p0 = pnand %p3050_p13, %p3044_p10 }
  0xfe   :  { %3054 = shalt.err (!%p3051_p0)
}
  0xff   :  { %s3055_s27 = scalar_lea.hbm %s3198_s3, 64 }
 0x100   :  { %p3056_p1 = scmp.ne.s32.totalorder %s3198_s3, %s3055_s27  ;;  %p3059_p2 = scmp.lt.u32.totalorder %s3055_s27, %s3198_s3 }
 0x102   :  { %p3061_p3 = pnand %p3059_p2, %p3056_p1 }
 0x104   :  { %3064 = shalt.err (!%p3061_p3)
}
 0x105   :  { %2443 = dma.vmem_to_hbm [thread:$0]  %s2441_s24, 64, %s3198_s3, [#allocation9]  }
 0x106   :  { %3069 = dma.done.wait [#allocation4], 32768  }
 0x107   :  { %3070 = vsyncadd [#allocation4], 4294934528 }
 0x108   :  { %3071 = dma.done.wait [#allocation9], 64  }
 0x109   :  { %3072 = vsyncadd [#allocation9], 4294967232 }
 0x10a   :  { %2450 = vsyncpa [#allocation3], 1 }
 0x10b   :  { %2451 = vsyncpa [#allocation6], 1 }
 0x10c   :  { %2452 = vsyncpa [#allocation4], 1 }
 0x10d   :  { %2453 = vsyncpa [#allocation9], 1 }

</bundles_post_ra>
